<compile_context>
chip_gen: v7x
topology: tpu7x:2x2x1
jax: 0.10.0
libtpu: 0.0.40
codegen_flags: <defaults>
</compile_context>

<pallas_src>
from functools import partial

import jax
import jax.numpy as jnp
import numpy as np
from jax.experimental import pallas as pl
from jax.experimental.pallas import tpu as pltpu


def discriminator_kernel(x_tb_ref, lastidx_ref,
                         wl_ref, bl_ref,
                         wih0_ref, whh0_ref, b0_ref,
                         wih1_ref, whh1_ref, b1_ref,
                         wo_ref, bo_ref,
                         out_ref,
                         *, batch, time_step, d_model):
    B = batch
    T = time_step
    D = d_model

    # ---- load all weights ONCE (resident across the whole recurrence) ------
    wl = wl_ref[...]              # (F_in, D)
    bl = bl_ref[...]              # (1, D)
    wih0 = wih0_ref[...]          # (D, 4D)  fused gates i|f|g|o
    whh0 = whh0_ref[...]          # (D, 4D)
    b0 = b0_ref[...]              # (1, 4D)  = b_ih + b_hh
    wih1 = wih1_ref[...]          # (D, 4D)
    whh1 = whh1_ref[...]          # (D, 4D)
    b1 = b1_ref[...]              # (1, 4D)
    last_valid = lastidx_ref[...]  # (B, 1) int32

    # ---- hoisted, time-invariant work --------------------------------------
    # local_dis + relu for ALL timesteps in one matmul: (T*B, F) @ (F, D)
    x_all = jnp.maximum(
        jnp.dot(x_tb_ref[...].astype(jnp.float32), wl,
                preferred_element_type=jnp.float32) + bl, 0.0)          # (T*B, D)
    # layer-0 input-to-hidden projection for ALL timesteps in one matmul
    xproj0 = jnp.dot(x_all, wih0, preferred_element_type=jnp.float32) + b0  # (T*B, 4D)

    sig = jax.nn.sigmoid  # exact sigmoid; exp/recip land on the EUP slot

    h1 = jnp.zeros((B, D), jnp.float32)
    c1 = jnp.zeros((B, D), jnp.float32)
    h2 = jnp.zeros((B, D), jnp.float32)
    c2 = jnp.zeros((B, D), jnp.float32)
    hn_last = jnp.zeros((B, D), jnp.float32)

    # Static unroll over time (time_step is a compile-time constant).
    for t in range(T):
        # ---- layer 0: only the fused h-recurrence matmul remains in-loop
        gates0 = xproj0[t * B:(t + 1) * B, :] + jnp.dot(
            h1, whh0, preferred_element_type=jnp.float32)               # (B, 4D)
        i0 = sig(gates0[:, 0:D])
        f0 = sig(gates0[:, D:2 * D])
        g0 = jnp.tanh(gates0[:, 2 * D:3 * D])
        o0 = sig(gates0[:, 3 * D:4 * D])
        c1 = f0 * c1 + i0 * g0
        h1 = o0 * jnp.tanh(c1)

        # ---- layer 1: two fused full-lane matmuls (ih + hh)
        gates1 = (jnp.dot(h1, wih1, preferred_element_type=jnp.float32)
                  + jnp.dot(h2, whh1, preferred_element_type=jnp.float32)
                  + b1)                                                  # (B, 4D)
        i1 = sig(gates1[:, 0:D])
        f1 = sig(gates1[:, D:2 * D])
        g1 = jnp.tanh(gates1[:, 2 * D:3 * D])
        o1 = sig(gates1[:, 3 * D:4 * D])
        c2 = f1 * c2 + i1 * g1
        h2 = o1 * jnp.tanh(c2)

        # torch.gather(xn, 1, last_valid_idx) as a masked accumulation
        sel = (last_valid == t).astype(jnp.float32)                      # (B, 1)
        hn_last = hn_last + sel * h2

    out = (jnp.dot(hn_last, wo_ref[...], preferred_element_type=jnp.float32)
           + bo_ref[...])
    out_ref[...] = out.astype(out_ref.dtype)


def discriminator_forward(sample, src_mask, params, *, time_step, d_model):
    B, T, F = sample.shape
    assert T == time_step
    # last_valid_idx computed in the wrapper (no mask DMA / in-kernel reduce)
    last_valid = (jnp.sum(jnp.logical_not(src_mask), axis=1).astype(jnp.int32)
                  - 1).reshape(B, 1)
    # (B, T, F) -> (T*B, F): timestep t is the contiguous row block [t*B, (t+1)*B)
    x_tb = jnp.transpose(sample, (1, 0, 2)).reshape(T * B, F)

    kernel = partial(discriminator_kernel, batch=B, time_step=T, d_model=d_model)
    n_in = 12
    return pl.pallas_call(
        kernel,
        out_shape=jax.ShapeDtypeStruct((B, 1), jnp.float32),
        in_specs=[pl.BlockSpec(memory_space=pltpu.MemorySpace.VMEM)] * n_in,
        out_specs=pl.BlockSpec(memory_space=pltpu.MemorySpace.VMEM),
    )(x_tb, last_valid,
      params["wl"], params["bl"],
      params["wih0"], params["whh0"], params["b0"],
      params["wih1"], params["whh1"], params["b1"],
      params["wo"], params["bo"])


def init_params(key, in_dim, d_model):
    """Deterministic synthetic init (uniform, PyTorch-style scale).

    LSTM weights are stored pre-transposed and gate-fused: (in, 4*D) with gate
    order i|f|g|o along the last (lane) dim; biases are b_ih + b_hh, (1, 4*D).
    """
    D = d_model
    s = 1.0 / np.sqrt(D)
    ks = jax.random.split(key, 12)
    u = lambda k, shape: jax.random.uniform(k, shape, jnp.float32, -s, s)
    return {
        "wl":   u(ks[0], (in_dim, D)),
        "bl":   u(ks[1], (1, D)),
        # layer 0 LSTM (fused gates)
        "wih0": u(ks[2], (D, 4 * D)),
        "whh0": u(ks[3], (D, 4 * D)),
        "b0":   u(ks[4], (1, 4 * D)) + u(ks[5], (1, 4 * D)),
        # layer 1 LSTM (fused gates)
        "wih1": u(ks[6], (D, 4 * D)),
        "whh1": u(ks[7], (D, 4 * D)),
        "b1":   u(ks[8], (1, 4 * D)) + u(ks[9], (1, 4 * D)),
        "wo":   u(ks[10], (D, 1)),
        "bo":   u(ks[11], (1, 1)),
    }


def discriminator_ref(sample, src_mask, params):
    """Pure-JAX reference mirroring PyTorch semantics (for verification)."""
    wl, bl = params["wl"], params["bl"]
    B, T, _ = sample.shape
    D = wl.shape[1]
    last_valid = jnp.sum(~src_mask, axis=1) - 1                 # (B,)
    x = jnp.maximum(jnp.einsum("btf,fd->btd", sample, wl) + bl, 0.0)

    def cell(x_t, h, c, wih, whh, b):
        gates = x_t @ wih + h @ whh + b                          # (B, 4D)
        i, f, g, o = jnp.split(gates, 4, axis=-1)
        c = jax.nn.sigmoid(f) * c + jax.nn.sigmoid(i) * jnp.tanh(g)
        h = jax.nn.sigmoid(o) * jnp.tanh(c)
        return h, c

    h1 = c1 = h2 = c2 = jnp.zeros((B, D), jnp.float32)
    outs = []
    for t in range(T):
        h1, c1 = cell(x[:, t, :], h1, c1, params["wih0"], params["whh0"], params["b0"])
        h2, c2 = cell(h1, h2, c2, params["wih1"], params["whh1"], params["b1"])
        outs.append(h2)
    xn = jnp.stack(outs, axis=1)                                # (B, T, D)
    hn_last = xn[jnp.arange(B), last_valid]                     # (B, D)
    return hn_last @ params["wo"] + params["bo"]


if __name__ == "__main__":
    # Module hyper-params (small, consistent with the forward pass)
    x_dim, time_step, d_model, embedding_len = 6, 8, 32, 4
    in_dim = x_dim - 2 + 2 * embedding_len        # = 12
    B = 2

    key = jax.random.PRNGKey(0)
    k_s, k_p = jax.random.split(key)
    sample = jax.random.normal(k_s, (B, time_step, in_dim), jnp.float32)

    # src_mask: True = padded position; valid lengths per batch element
    lengths = jnp.array([time_step, 5], dtype=jnp.int32)
    src_mask = jnp.arange(time_step)[None, :] >= lengths[:, None]      # (B, T) bool

    params = init_params(k_p, in_dim, d_model)

    out = discriminator_forward(sample, src_mask, params,
                                time_step=time_step, d_model=d_model)
    out = jax.block_until_ready(out)

    ref = discriminator_ref(sample, src_mask, params)
    assert out.shape == (B, 1)
    np.testing.assert_allclose(np.asarray(out), np.asarray(ref), atol=1e-4, rtol=1e-4)
    print("KERNEL_OK")
</pallas_src>

<mosaic_0001>
module attributes {stable_mosaic.version = 11 : i64} {
  func.func @discriminator_kernel(%arg0: memref<16x12xf32, #tpu.memory_space<vmem>>, %arg1: memref<2x1xi32, #tpu.memory_space<vmem>>, %arg2: memref<12x32xf32, #tpu.memory_space<vmem>>, %arg3: memref<1x32xf32, #tpu.memory_space<vmem>>, %arg4: memref<32x128xf32, #tpu.memory_space<vmem>>, %arg5: memref<32x128xf32, #tpu.memory_space<vmem>>, %arg6: memref<1x128xf32, #tpu.memory_space<vmem>>, %arg7: memref<32x128xf32, #tpu.memory_space<vmem>>, %arg8: memref<32x128xf32, #tpu.memory_space<vmem>>, %arg9: memref<1x128xf32, #tpu.memory_space<vmem>>, %arg10: memref<32x1xf32, #tpu.memory_space<vmem>>, %arg11: memref<1x1xf32, #tpu.memory_space<vmem>>, %arg12: memref<2x1xf32, #tpu.memory_space<vmem>>) attributes {dimension_semantics = [], scalar_prefetch = 0 : i64, scratch_operands = 0 : i64, tpu.core_type = #tpu.core_type<tc>} {
    %c0 = arith.constant 0 : index
    %c0_0 = arith.constant 0 : index
    %0 = vector.load %arg2[%c0, %c0_0] : memref<12x32xf32, #tpu.memory_space<vmem>>, vector<12x32xf32>
    %c0_1 = arith.constant 0 : index
    %c0_2 = arith.constant 0 : index
    %1 = vector.load %arg3[%c0_1, %c0_2] : memref<1x32xf32, #tpu.memory_space<vmem>>, vector<1x32xf32>
    %c0_3 = arith.constant 0 : index
    %c0_4 = arith.constant 0 : index
    %2 = vector.load %arg4[%c0_3, %c0_4] : memref<32x128xf32, #tpu.memory_space<vmem>>, vector<32x128xf32>
    %c0_5 = arith.constant 0 : index
    %c0_6 = arith.constant 0 : index
    %3 = vector.load %arg5[%c0_5, %c0_6] : memref<32x128xf32, #tpu.memory_space<vmem>>, vector<32x128xf32>
    %c0_7 = arith.constant 0 : index
    %c0_8 = arith.constant 0 : index
    %4 = vector.load %arg6[%c0_7, %c0_8] : memref<1x128xf32, #tpu.memory_space<vmem>>, vector<1x128xf32>
    %c0_9 = arith.constant 0 : index
    %c0_10 = arith.constant 0 : index
    %5 = vector.load %arg7[%c0_9, %c0_10] : memref<32x128xf32, #tpu.memory_space<vmem>>, vector<32x128xf32>
    %c0_11 = arith.constant 0 : index
    %c0_12 = arith.constant 0 : index
    %6 = vector.load %arg8[%c0_11, %c0_12] : memref<32x128xf32, #tpu.memory_space<vmem>>, vector<32x128xf32>
    %c0_13 = arith.constant 0 : index
    %c0_14 = arith.constant 0 : index
    %7 = vector.load %arg9[%c0_13, %c0_14] : memref<1x128xf32, #tpu.memory_space<vmem>>, vector<1x128xf32>
    %c0_15 = arith.constant 0 : index
    %c0_16 = arith.constant 0 : index
    %8 = vector.load %arg1[%c0_15, %c0_16] : memref<2x1xi32, #tpu.memory_space<vmem>>, vector<2x1xi32>
    %c0_17 = arith.constant 0 : index
    %c0_18 = arith.constant 0 : index
    %9 = vector.load %arg0[%c0_17, %c0_18] : memref<16x12xf32, #tpu.memory_space<vmem>>, vector<16x12xf32>
    %cst = arith.constant dense<0.000000e+00> : vector<16x32xf32>
    %10 = tpu.matmul %9, %0, %cst {dimension_numbers = #tpu.dot_dimension_numbers<[1], [0], [0], [1], [0, 0, 1, 1], [], []>} : vector<16x12xf32>, vector<12x32xf32>, vector<16x32xf32> -> vector<16x32xf32>
    %11 = vector.broadcast %1 : vector<1x32xf32> to vector<16x32xf32>
    %12 = arith.addf %10, %11 : vector<16x32xf32>
    %cst_19 = arith.constant 0.000000e+00 : f32
    %13 = vector.broadcast %cst_19 : f32 to vector<16x32xf32>
    %14 = arith.maximumf %12, %13 : vector<16x32xf32>
    %cst_20 = arith.constant dense<0.000000e+00> : vector<16x128xf32>
    %15 = tpu.matmul %14, %2, %cst_20 {dimension_numbers = #tpu.dot_dimension_numbers<[1], [0], [0], [1], [0, 0, 1, 1], [], []>} : vector<16x32xf32>, vector<32x128xf32>, vector<16x128xf32> -> vector<16x128xf32>
    %16 = vector.broadcast %4 : vector<1x128xf32> to vector<16x128xf32>
    %17 = arith.addf %15, %16 : vector<16x128xf32>
    %cst_21 = arith.constant 0.000000e+00 : f32
    %18 = vector.broadcast %cst_21 : f32 to vector<2x32xf32>
    %cst_22 = arith.constant 0.000000e+00 : f32
    %19 = vector.broadcast %cst_22 : f32 to vector<2x32xf32>
    %cst_23 = arith.constant 0.000000e+00 : f32
    %20 = vector.broadcast %cst_23 : f32 to vector<2x32xf32>
    %cst_24 = arith.constant 0.000000e+00 : f32
    %21 = vector.broadcast %cst_24 : f32 to vector<2x32xf32>
    %cst_25 = arith.constant 0.000000e+00 : f32
    %22 = vector.broadcast %cst_25 : f32 to vector<2x32xf32>
    %23 = vector.extract_strided_slice %17 {offsets = [0, 0], sizes = [2, 128], strides = [1, 1]} : vector<16x128xf32> to vector<2x128xf32>
    %cst_26 = arith.constant dense<0.000000e+00> : vector<2x128xf32>
    %24 = tpu.matmul %18, %3, %cst_26 {dimension_numbers = #tpu.dot_dimension_numbers<[1], [0], [0], [1], [0, 0, 1, 1], [], []>} : vector<2x32xf32>, vector<32x128xf32>, vector<2x128xf32> -> vector<2x128xf32>
    %25 = arith.addf %23, %24 : vector<2x128xf32>
    %26 = vector.extract_strided_slice %25 {offsets = [0, 0], sizes = [2, 32], strides = [1, 1]} : vector<2x128xf32> to vector<2x32xf32>
    %27 = arith.negf %26 : vector<2x32xf32>
    %28 = math.exp %27 : vector<2x32xf32>
    %cst_27 = arith.constant 1.000000e+00 : f32
    %29 = vector.broadcast %cst_27 : f32 to vector<2x32xf32>
    %30 = arith.addf %29, %28 : vector<2x32xf32>
    %31 = arith.divf %29, %30 : vector<2x32xf32>
    %32 = vector.extract_strided_slice %25 {offsets = [0, 32], sizes = [2, 32], strides = [1, 1]} : vector<2x128xf32> to vector<2x32xf32>
    %33 = arith.negf %32 : vector<2x32xf32>
    %34 = math.exp %33 : vector<2x32xf32>
    %cst_28 = arith.constant 1.000000e+00 : f32
    %35 = vector.broadcast %cst_28 : f32 to vector<2x32xf32>
    %36 = arith.addf %35, %34 : vector<2x32xf32>
    %37 = arith.divf %35, %36 : vector<2x32xf32>
    %38 = vector.extract_strided_slice %25 {offsets = [0, 64], sizes = [2, 32], strides = [1, 1]} : vector<2x128xf32> to vector<2x32xf32>
    %39 = math.tanh %38 : vector<2x32xf32>
    %40 = vector.extract_strided_slice %25 {offsets = [0, 96], sizes = [2, 32], strides = [1, 1]} : vector<2x128xf32> to vector<2x32xf32>
    %41 = arith.negf %40 : vector<2x32xf32>
    %42 = math.exp %41 : vector<2x32xf32>
    %cst_29 = arith.constant 1.000000e+00 : f32
    %43 = vector.broadcast %cst_29 : f32 to vector<2x32xf32>
    %44 = arith.addf %43, %42 : vector<2x32xf32>
    %45 = arith.divf %43, %44 : vector<2x32xf32>
    %46 = arith.mulf %37, %19 : vector<2x32xf32>
    %47 = arith.mulf %31, %39 : vector<2x32xf32>
    %48 = arith.addf %46, %47 : vector<2x32xf32>
    %49 = math.tanh %48 : vector<2x32xf32>
    %50 = arith.mulf %45, %49 : vector<2x32xf32>
    %cst_30 = arith.constant dense<0.000000e+00> : vector<2x128xf32>
    %51 = tpu.matmul %50, %5, %cst_30 {dimension_numbers = #tpu.dot_dimension_numbers<[1], [0], [0], [1], [0, 0, 1, 1], [], []>} : vector<2x32xf32>, vector<32x128xf32>, vector<2x128xf32> -> vector<2x128xf32>
    %cst_31 = arith.constant dense<0.000000e+00> : vector<2x128xf32>
    %52 = tpu.matmul %20, %6, %cst_31 {dimension_numbers = #tpu.dot_dimension_numbers<[1], [0], [0], [1], [0, 0, 1, 1], [], []>} : vector<2x32xf32>, vector<32x128xf32>, vector<2x128xf32> -> vector<2x128xf32>
    %53 = arith.addf %51, %52 : vector<2x128xf32>
    %54 = vector.broadcast %7 : vector<1x128xf32> to vector<2x128xf32>
    %55 = arith.addf %53, %54 : vector<2x128xf32>
    %56 = vector.extract_strided_slice %55 {offsets = [0, 0], sizes = [2, 32], strides = [1, 1]} : vector<2x128xf32> to vector<2x32xf32>
    %57 = arith.negf %56 : vector<2x32xf32>
    %58 = math.exp %57 : vector<2x32xf32>
    %cst_32 = arith.constant 1.000000e+00 : f32
    %59 = vector.broadcast %cst_32 : f32 to vector<2x32xf32>
    %60 = arith.addf %59, %58 : vector<2x32xf32>
    %61 = arith.divf %59, %60 : vector<2x32xf32>
    %62 = vector.extract_strided_slice %55 {offsets = [0, 32], sizes = [2, 32], strides = [1, 1]} : vector<2x128xf32> to vector<2x32xf32>
    %63 = arith.negf %62 : vector<2x32xf32>
    %64 = math.exp %63 : vector<2x32xf32>
    %cst_33 = arith.constant 1.000000e+00 : f32
    %65 = vector.broadcast %cst_33 : f32 to vector<2x32xf32>
    %66 = arith.addf %65, %64 : vector<2x32xf32>
    %67 = arith.divf %65, %66 : vector<2x32xf32>
    %68 = vector.extract_strided_slice %55 {offsets = [0, 64], sizes = [2, 32], strides = [1, 1]} : vector<2x128xf32> to vector<2x32xf32>
    %69 = math.tanh %68 : vector<2x32xf32>
    %70 = vector.extract_strided_slice %55 {offsets = [0, 96], sizes = [2, 32], strides = [1, 1]} : vector<2x128xf32> to vector<2x32xf32>
    %71 = arith.negf %70 : vector<2x32xf32>
    %72 = math.exp %71 : vector<2x32xf32>
    %cst_34 = arith.constant 1.000000e+00 : f32
    %73 = vector.broadcast %cst_34 : f32 to vector<2x32xf32>
    %74 = arith.addf %73, %72 : vector<2x32xf32>
    %75 = arith.divf %73, %74 : vector<2x32xf32>
    %76 = arith.mulf %67, %21 : vector<2x32xf32>
    %77 = arith.mulf %61, %69 : vector<2x32xf32>
    %78 = arith.addf %76, %77 : vector<2x32xf32>
    %79 = math.tanh %78 : vector<2x32xf32>
    %80 = arith.mulf %75, %79 : vector<2x32xf32>
    %c0_i32 = arith.constant 0 : i32
    %81 = vector.broadcast %c0_i32 : i32 to vector<2x1xi32>
    %82 = arith.cmpi eq, %8, %81 : vector<2x1xi32>
    %83 = arith.extui %82 : vector<2x1xi1> to vector<2x1xi32>
    %84 = arith.sitofp %83 : vector<2x1xi32> to vector<2x1xf32>
    %85 = vector.broadcast %84 : vector<2x1xf32> to vector<2x32xf32>
    %86 = arith.mulf %85, %80 : vector<2x32xf32>
    %87 = arith.addf %22, %86 : vector<2x32xf32>
    %88 = vector.extract_strided_slice %17 {offsets = [2, 0], sizes = [2, 128], strides = [1, 1]} : vector<16x128xf32> to vector<2x128xf32>
    %cst_35 = arith.constant dense<0.000000e+00> : vector<2x128xf32>
    %89 = tpu.matmul %50, %3, %cst_35 {dimension_numbers = #tpu.dot_dimension_numbers<[1], [0], [0], [1], [0, 0, 1, 1], [], []>} : vector<2x32xf32>, vector<32x128xf32>, vector<2x128xf32> -> vector<2x128xf32>
    %90 = arith.addf %88, %89 : vector<2x128xf32>
    %91 = vector.extract_strided_slice %90 {offsets = [0, 0], sizes = [2, 32], strides = [1, 1]} : vector<2x128xf32> to vector<2x32xf32>
    %92 = arith.negf %91 : vector<2x32xf32>
    %93 = math.exp %92 : vector<2x32xf32>
    %cst_36 = arith.constant 1.000000e+00 : f32
    %94 = vector.broadcast %cst_36 : f32 to vector<2x32xf32>
    %95 = arith.addf %94, %93 : vector<2x32xf32>
    %96 = arith.divf %94, %95 : vector<2x32xf32>
    %97 = vector.extract_strided_slice %90 {offsets = [0, 32], sizes = [2, 32], strides = [1, 1]} : vector<2x128xf32> to vector<2x32xf32>
    %98 = arith.negf %97 : vector<2x32xf32>
    %99 = math.exp %98 : vector<2x32xf32>
    %cst_37 = arith.constant 1.000000e+00 : f32
    %100 = vector.broadcast %cst_37 : f32 to vector<2x32xf32>
    %101 = arith.addf %100, %99 : vector<2x32xf32>
    %102 = arith.divf %100, %101 : vector<2x32xf32>
    %103 = vector.extract_strided_slice %90 {offsets = [0, 64], sizes = [2, 32], strides = [1, 1]} : vector<2x128xf32> to vector<2x32xf32>
    %104 = math.tanh %103 : vector<2x32xf32>
    %105 = vector.extract_strided_slice %90 {offsets = [0, 96], sizes = [2, 32], strides = [1, 1]} : vector<2x128xf32> to vector<2x32xf32>
    %106 = arith.negf %105 : vector<2x32xf32>
    %107 = math.exp %106 : vector<2x32xf32>
    %cst_38 = arith.constant 1.000000e+00 : f32
    %108 = vector.broadcast %cst_38 : f32 to vector<2x32xf32>
    %109 = arith.addf %108, %107 : vector<2x32xf32>
    %110 = arith.divf %108, %109 : vector<2x32xf32>
    %111 = arith.mulf %102, %48 : vector<2x32xf32>
    %112 = arith.mulf %96, %104 : vector<2x32xf32>
    %113 = arith.addf %111, %112 : vector<2x32xf32>
    %114 = math.tanh %113 : vector<2x32xf32>
    %115 = arith.mulf %110, %114 : vector<2x32xf32>
    %cst_39 = arith.constant dense<0.000000e+00> : vector<2x128xf32>
    %116 = tpu.matmul %115, %5, %cst_39 {dimension_numbers = #tpu.dot_dimension_numbers<[1], [0], [0], [1], [0, 0, 1, 1], [], []>} : vector<2x32xf32>, vector<32x128xf32>, vector<2x128xf32> -> vector<2x128xf32>
    %cst_40 = arith.constant dense<0.000000e+00> : vector<2x128xf32>
    %117 = tpu.matmul %80, %6, %cst_40 {dimension_numbers = #tpu.dot_dimension_numbers<[1], [0], [0], [1], [0, 0, 1, 1], [], []>} : vector<2x32xf32>, vector<32x128xf32>, vector<2x128xf32> -> vector<2x128xf32>
    %118 = arith.addf %116, %117 : vector<2x128xf32>
    %119 = vector.broadcast %7 : vector<1x128xf32> to vector<2x128xf32>
    %120 = arith.addf %118, %119 : vector<2x128xf32>
    %121 = vector.extract_strided_slice %120 {offsets = [0, 0], sizes = [2, 32], strides = [1, 1]} : vector<2x128xf32> to vector<2x32xf32>
    %122 = arith.negf %121 : vector<2x32xf32>
    %123 = math.exp %122 : vector<2x32xf32>
    %cst_41 = arith.constant 1.000000e+00 : f32
    %124 = vector.broadcast %cst_41 : f32 to vector<2x32xf32>
    %125 = arith.addf %124, %123 : vector<2x32xf32>
    %126 = arith.divf %124, %125 : vector<2x32xf32>
    %127 = vector.extract_strided_slice %120 {offsets = [0, 32], sizes = [2, 32], strides = [1, 1]} : vector<2x128xf32> to vector<2x32xf32>
    %128 = arith.negf %127 : vector<2x32xf32>
    %129 = math.exp %128 : vector<2x32xf32>
    %cst_42 = arith.constant 1.000000e+00 : f32
    %130 = vector.broadcast %cst_42 : f32 to vector<2x32xf32>
    %131 = arith.addf %130, %129 : vector<2x32xf32>
    %132 = arith.divf %130, %131 : vector<2x32xf32>
    %133 = vector.extract_strided_slice %120 {offsets = [0, 64], sizes = [2, 32], strides = [1, 1]} : vector<2x128xf32> to vector<2x32xf32>
    %134 = math.tanh %133 : vector<2x32xf32>
    %135 = vector.extract_strided_slice %120 {offsets = [0, 96], sizes = [2, 32], strides = [1, 1]} : vector<2x128xf32> to vector<2x32xf32>
    %136 = arith.negf %135 : vector<2x32xf32>
    %137 = math.exp %136 : vector<2x32xf32>
    %cst_43 = arith.constant 1.000000e+00 : f32
    %138 = vector.broadcast %cst_43 : f32 to vector<2x32xf32>
    %139 = arith.addf %138, %137 : vector<2x32xf32>
    %140 = arith.divf %138, %139 : vector<2x32xf32>
    %141 = arith.mulf %132, %78 : vector<2x32xf32>
    %142 = arith.mulf %126, %134 : vector<2x32xf32>
    %143 = arith.addf %141, %142 : vector<2x32xf32>
    %144 = math.tanh %143 : vector<2x32xf32>
    %145 = arith.mulf %140, %144 : vector<2x32xf32>
    %c1_i32 = arith.constant 1 : i32
    %146 = vector.broadcast %c1_i32 : i32 to vector<2x1xi32>
    %147 = arith.cmpi eq, %8, %146 : vector<2x1xi32>
    %148 = arith.extui %147 : vector<2x1xi1> to vector<2x1xi32>
    %149 = arith.sitofp %148 : vector<2x1xi32> to vector<2x1xf32>
    %150 = vector.broadcast %149 : vector<2x1xf32> to vector<2x32xf32>
    %151 = arith.mulf %150, %145 : vector<2x32xf32>
    %152 = arith.addf %87, %151 : vector<2x32xf32>
    %153 = vector.extract_strided_slice %17 {offsets = [4, 0], sizes = [2, 128], strides = [1, 1]} : vector<16x128xf32> to vector<2x128xf32>
    %cst_44 = arith.constant dense<0.000000e+00> : vector<2x128xf32>
    %154 = tpu.matmul %115, %3, %cst_44 {dimension_numbers = #tpu.dot_dimension_numbers<[1], [0], [0], [1], [0, 0, 1, 1], [], []>} : vector<2x32xf32>, vector<32x128xf32>, vector<2x128xf32> -> vector<2x128xf32>
    %155 = arith.addf %153, %154 : vector<2x128xf32>
    %156 = vector.extract_strided_slice %155 {offsets = [0, 0], sizes = [2, 32], strides = [1, 1]} : vector<2x128xf32> to vector<2x32xf32>
    %157 = arith.negf %156 : vector<2x32xf32>
    %158 = math.exp %157 : vector<2x32xf32>
    %cst_45 = arith.constant 1.000000e+00 : f32
    %159 = vector.broadcast %cst_45 : f32 to vector<2x32xf32>
    %160 = arith.addf %159, %158 : vector<2x32xf32>
    %161 = arith.divf %159, %160 : vector<2x32xf32>
    %162 = vector.extract_strided_slice %155 {offsets = [0, 32], sizes = [2, 32], strides = [1, 1]} : vector<2x128xf32> to vector<2x32xf32>
    %163 = arith.negf %162 : vector<2x32xf32>
    %164 = math.exp %163 : vector<2x32xf32>
    %cst_46 = arith.constant 1.000000e+00 : f32
    %165 = vector.broadcast %cst_46 : f32 to vector<2x32xf32>
    %166 = arith.addf %165, %164 : vector<2x32xf32>
    %167 = arith.divf %165, %166 : vector<2x32xf32>
    %168 = vector.extract_strided_slice %155 {offsets = [0, 64], sizes = [2, 32], strides = [1, 1]} : vector<2x128xf32> to vector<2x32xf32>
    %169 = math.tanh %168 : vector<2x32xf32>
    %170 = vector.extract_strided_slice %155 {offsets = [0, 96], sizes = [2, 32], strides = [1, 1]} : vector<2x128xf32> to vector<2x32xf32>
    %171 = arith.negf %170 : vector<2x32xf32>
    %172 = math.exp %171 : vector<2x32xf32>
    %cst_47 = arith.constant 1.000000e+00 : f32
    %173 = vector.broadcast %cst_47 : f32 to vector<2x32xf32>
    %174 = arith.addf %173, %172 : vector<2x32xf32>
    %175 = arith.divf %173, %174 : vector<2x32xf32>
    %176 = arith.mulf %167, %113 : vector<2x32xf32>
    %177 = arith.mulf %161, %169 : vector<2x32xf32>
    %178 = arith.addf %176, %177 : vector<2x32xf32>
    %179 = math.tanh %178 : vector<2x32xf32>
    %180 = arith.mulf %175, %179 : vector<2x32xf32>
    %cst_48 = arith.constant dense<0.000000e+00> : vector<2x128xf32>
    %181 = tpu.matmul %180, %5, %cst_48 {dimension_numbers = #tpu.dot_dimension_numbers<[1], [0], [0], [1], [0, 0, 1, 1], [], []>} : vector<2x32xf32>, vector<32x128xf32>, vector<2x128xf32> -> vector<2x128xf32>
    %cst_49 = arith.constant dense<0.000000e+00> : vector<2x128xf32>
    %182 = tpu.matmul %145, %6, %cst_49 {dimension_numbers = #tpu.dot_dimension_numbers<[1], [0], [0], [1], [0, 0, 1, 1], [], []>} : vector<2x32xf32>, vector<32x128xf32>, vector<2x128xf32> -> vector<2x128xf32>
    %183 = arith.addf %181, %182 : vector<2x128xf32>
    %184 = vector.broadcast %7 : vector<1x128xf32> to vector<2x128xf32>
    %185 = arith.addf %183, %184 : vector<2x128xf32>
    %186 = vector.extract_strided_slice %185 {offsets = [0, 0], sizes = [2, 32], strides = [1, 1]} : vector<2x128xf32> to vector<2x32xf32>
    %187 = arith.negf %186 : vector<2x32xf32>
    %188 = math.exp %187 : vector<2x32xf32>
    %cst_50 = arith.constant 1.000000e+00 : f32
    %189 = vector.broadcast %cst_50 : f32 to vector<2x32xf32>
    %190 = arith.addf %189, %188 : vector<2x32xf32>
    %191 = arith.divf %189, %190 : vector<2x32xf32>
    %192 = vector.extract_strided_slice %185 {offsets = [0, 32], sizes = [2, 32], strides = [1, 1]} : vector<2x128xf32> to vector<2x32xf32>
    %193 = arith.negf %192 : vector<2x32xf32>
    %194 = math.exp %193 : vector<2x32xf32>
    %cst_51 = arith.constant 1.000000e+00 : f32
    %195 = vector.broadcast %cst_51 : f32 to vector<2x32xf32>
    %196 = arith.addf %195, %194 : vector<2x32xf32>
    %197 = arith.divf %195, %196 : vector<2x32xf32>
    %198 = vector.extract_strided_slice %185 {offsets = [0, 64], sizes = [2, 32], strides = [1, 1]} : vector<2x128xf32> to vector<2x32xf32>
    %199 = math.tanh %198 : vector<2x32xf32>
    %200 = vector.extract_strided_slice %185 {offsets = [0, 96], sizes = [2, 32], strides = [1, 1]} : vector<2x128xf32> to vector<2x32xf32>
    %201 = arith.negf %200 : vector<2x32xf32>
    %202 = math.exp %201 : vector<2x32xf32>
    %cst_52 = arith.constant 1.000000e+00 : f32
    %203 = vector.broadcast %cst_52 : f32 to vector<2x32xf32>
    %204 = arith.addf %203, %202 : vector<2x32xf32>
    %205 = arith.divf %203, %204 : vector<2x32xf32>
    %206 = arith.mulf %197, %143 : vector<2x32xf32>
    %207 = arith.mulf %191, %199 : vector<2x32xf32>
    %208 = arith.addf %206, %207 : vector<2x32xf32>
    %209 = math.tanh %208 : vector<2x32xf32>
    %210 = arith.mulf %205, %209 : vector<2x32xf32>
    %c2_i32 = arith.constant 2 : i32
    %211 = vector.broadcast %c2_i32 : i32 to vector<2x1xi32>
    %212 = arith.cmpi eq, %8, %211 : vector<2x1xi32>
    %213 = arith.extui %212 : vector<2x1xi1> to vector<2x1xi32>
    %214 = arith.sitofp %213 : vector<2x1xi32> to vector<2x1xf32>
    %215 = vector.broadcast %214 : vector<2x1xf32> to vector<2x32xf32>
    %216 = arith.mulf %215, %210 : vector<2x32xf32>
    %217 = arith.addf %152, %216 : vector<2x32xf32>
    %218 = vector.extract_strided_slice %17 {offsets = [6, 0], sizes = [2, 128], strides = [1, 1]} : vector<16x128xf32> to vector<2x128xf32>
    %cst_53 = arith.constant dense<0.000000e+00> : vector<2x128xf32>
    %219 = tpu.matmul %180, %3, %cst_53 {dimension_numbers = #tpu.dot_dimension_numbers<[1], [0], [0], [1], [0, 0, 1, 1], [], []>} : vector<2x32xf32>, vector<32x128xf32>, vector<2x128xf32> -> vector<2x128xf32>
    %220 = arith.addf %218, %219 : vector<2x128xf32>
    %221 = vector.extract_strided_slice %220 {offsets = [0, 0], sizes = [2, 32], strides = [1, 1]} : vector<2x128xf32> to vector<2x32xf32>
    %222 = arith.negf %221 : vector<2x32xf32>
    %223 = math.exp %222 : vector<2x32xf32>
    %cst_54 = arith.constant 1.000000e+00 : f32
    %224 = vector.broadcast %cst_54 : f32 to vector<2x32xf32>
    %225 = arith.addf %224, %223 : vector<2x32xf32>
    %226 = arith.divf %224, %225 : vector<2x32xf32>
    %227 = vector.extract_strided_slice %220 {offsets = [0, 32], sizes = [2, 32], strides = [1, 1]} : vector<2x128xf32> to vector<2x32xf32>
    %228 = arith.negf %227 : vector<2x32xf32>
    %229 = math.exp %228 : vector<2x32xf32>
    %cst_55 = arith.constant 1.000000e+00 : f32
    %230 = vector.broadcast %cst_55 : f32 to vector<2x32xf32>
    %231 = arith.addf %230, %229 : vector<2x32xf32>
    %232 = arith.divf %230, %231 : vector<2x32xf32>
    %233 = vector.extract_strided_slice %220 {offsets = [0, 64], sizes = [2, 32], strides = [1, 1]} : vector<2x128xf32> to vector<2x32xf32>
    %234 = math.tanh %233 : vector<2x32xf32>
    %235 = vector.extract_strided_slice %220 {offsets = [0, 96], sizes = [2, 32], strides = [1, 1]} : vector<2x128xf32> to vector<2x32xf32>
    %236 = arith.negf %235 : vector<2x32xf32>
    %237 = math.exp %236 : vector<2x32xf32>
    %cst_56 = arith.constant 1.000000e+00 : f32
    %238 = vector.broadcast %cst_56 : f32 to vector<2x32xf32>
    %239 = arith.addf %238, %237 : vector<2x32xf32>
    %240 = arith.divf %238, %239 : vector<2x32xf32>
    %241 = arith.mulf %232, %178 : vector<2x32xf32>
    %242 = arith.mulf %226, %234 : vector<2x32xf32>
    %243 = arith.addf %241, %242 : vector<2x32xf32>
    %244 = math.tanh %243 : vector<2x32xf32>
    %245 = arith.mulf %240, %244 : vector<2x32xf32>
    %cst_57 = arith.constant dense<0.000000e+00> : vector<2x128xf32>
    %246 = tpu.matmul %245, %5, %cst_57 {dimension_numbers = #tpu.dot_dimension_numbers<[1], [0], [0], [1], [0, 0, 1, 1], [], []>} : vector<2x32xf32>, vector<32x128xf32>, vector<2x128xf32> -> vector<2x128xf32>
    %cst_58 = arith.constant dense<0.000000e+00> : vector<2x128xf32>
    %247 = tpu.matmul %210, %6, %cst_58 {dimension_numbers = #tpu.dot_dimension_numbers<[1], [0], [0], [1], [0, 0, 1, 1], [], []>} : vector<2x32xf32>, vector<32x128xf32>, vector<2x128xf32> -> vector<2x128xf32>
    %248 = arith.addf %246, %247 : vector<2x128xf32>
    %249 = vector.broadcast %7 : vector<1x128xf32> to vector<2x128xf32>
    %250 = arith.addf %248, %249 : vector<2x128xf32>
    %251 = vector.extract_strided_slice %250 {offsets = [0, 0], sizes = [2, 32], strides = [1, 1]} : vector<2x128xf32> to vector<2x32xf32>
    %252 = arith.negf %251 : vector<2x32xf32>
    %253 = math.exp %252 : vector<2x32xf32>
    %cst_59 = arith.constant 1.000000e+00 : f32
    %254 = vector.broadcast %cst_59 : f32 to vector<2x32xf32>
    %255 = arith.addf %254, %253 : vector<2x32xf32>
    %256 = arith.divf %254, %255 : vector<2x32xf32>
    %257 = vector.extract_strided_slice %250 {offsets = [0, 32], sizes = [2, 32], strides = [1, 1]} : vector<2x128xf32> to vector<2x32xf32>
    %258 = arith.negf %257 : vector<2x32xf32>
    %259 = math.exp %258 : vector<2x32xf32>
    %cst_60 = arith.constant 1.000000e+00 : f32
    %260 = vector.broadcast %cst_60 : f32 to vector<2x32xf32>
    %261 = arith.addf %260, %259 : vector<2x32xf32>
    %262 = arith.divf %260, %261 : vector<2x32xf32>
    %263 = vector.extract_strided_slice %250 {offsets = [0, 64], sizes = [2, 32], strides = [1, 1]} : vector<2x128xf32> to vector<2x32xf32>
    %264 = math.tanh %263 : vector<2x32xf32>
    %265 = vector.extract_strided_slice %250 {offsets = [0, 96], sizes = [2, 32], strides = [1, 1]} : vector<2x128xf32> to vector<2x32xf32>
    %266 = arith.negf %265 : vector<2x32xf32>
    %267 = math.exp %266 : vector<2x32xf32>
    %cst_61 = arith.constant 1.000000e+00 : f32
    %268 = vector.broadcast %cst_61 : f32 to vector<2x32xf32>
    %269 = arith.addf %268, %267 : vector<2x32xf32>
    %270 = arith.divf %268, %269 : vector<2x32xf32>
    %271 = arith.mulf %262, %208 : vector<2x32xf32>
    %272 = arith.mulf %256, %264 : vector<2x32xf32>
    %273 = arith.addf %271, %272 : vector<2x32xf32>
    %274 = math.tanh %273 : vector<2x32xf32>
    %275 = arith.mulf %270, %274 : vector<2x32xf32>
    %c3_i32 = arith.constant 3 : i32
    %276 = vector.broadcast %c3_i32 : i32 to vector<2x1xi32>
    %277 = arith.cmpi eq, %8, %276 : vector<2x1xi32>
    %278 = arith.extui %277 : vector<2x1xi1> to vector<2x1xi32>
    %279 = arith.sitofp %278 : vector<2x1xi32> to vector<2x1xf32>
    %280 = vector.broadcast %279 : vector<2x1xf32> to vector<2x32xf32>
    %281 = arith.mulf %280, %275 : vector<2x32xf32>
    %282 = arith.addf %217, %281 : vector<2x32xf32>
    %283 = vector.extract_strided_slice %17 {offsets = [8, 0], sizes = [2, 128], strides = [1, 1]} : vector<16x128xf32> to vector<2x128xf32>
    %cst_62 = arith.constant dense<0.000000e+00> : vector<2x128xf32>
    %284 = tpu.matmul %245, %3, %cst_62 {dimension_numbers = #tpu.dot_dimension_numbers<[1], [0], [0], [1], [0, 0, 1, 1], [], []>} : vector<2x32xf32>, vector<32x128xf32>, vector<2x128xf32> -> vector<2x128xf32>
    %285 = arith.addf %283, %284 : vector<2x128xf32>
    %286 = vector.extract_strided_slice %285 {offsets = [0, 0], sizes = [2, 32], strides = [1, 1]} : vector<2x128xf32> to vector<2x32xf32>
    %287 = arith.negf %286 : vector<2x32xf32>
    %288 = math.exp %287 : vector<2x32xf32>
    %cst_63 = arith.constant 1.000000e+00 : f32
    %289 = vector.broadcast %cst_63 : f32 to vector<2x32xf32>
    %290 = arith.addf %289, %288 : vector<2x32xf32>
    %291 = arith.divf %289, %290 : vector<2x32xf32>
    %292 = vector.extract_strided_slice %285 {offsets = [0, 32], sizes = [2, 32], strides = [1, 1]} : vector<2x128xf32> to vector<2x32xf32>
    %293 = arith.negf %292 : vector<2x32xf32>
    %294 = math.exp %293 : vector<2x32xf32>
    %cst_64 = arith.constant 1.000000e+00 : f32
    %295 = vector.broadcast %cst_64 : f32 to vector<2x32xf32>
    %296 = arith.addf %295, %294 : vector<2x32xf32>
    %297 = arith.divf %295, %296 : vector<2x32xf32>
    %298 = vector.extract_strided_slice %285 {offsets = [0, 64], sizes = [2, 32], strides = [1, 1]} : vector<2x128xf32> to vector<2x32xf32>
    %299 = math.tanh %298 : vector<2x32xf32>
    %300 = vector.extract_strided_slice %285 {offsets = [0, 96], sizes = [2, 32], strides = [1, 1]} : vector<2x128xf32> to vector<2x32xf32>
    %301 = arith.negf %300 : vector<2x32xf32>
    %302 = math.exp %301 : vector<2x32xf32>
    %cst_65 = arith.constant 1.000000e+00 : f32
    %303 = vector.broadcast %cst_65 : f32 to vector<2x32xf32>
    %304 = arith.addf %303, %302 : vector<2x32xf32>
    %305 = arith.divf %303, %304 : vector<2x32xf32>
    %306 = arith.mulf %297, %243 : vector<2x32xf32>
    %307 = arith.mulf %291, %299 : vector<2x32xf32>
    %308 = arith.addf %306, %307 : vector<2x32xf32>
    %309 = math.tanh %308 : vector<2x32xf32>
    %310 = arith.mulf %305, %309 : vector<2x32xf32>
    %cst_66 = arith.constant dense<0.000000e+00> : vector<2x128xf32>
    %311 = tpu.matmul %310, %5, %cst_66 {dimension_numbers = #tpu.dot_dimension_numbers<[1], [0], [0], [1], [0, 0, 1, 1], [], []>} : vector<2x32xf32>, vector<32x128xf32>, vector<2x128xf32> -> vector<2x128xf32>
    %cst_67 = arith.constant dense<0.000000e+00> : vector<2x128xf32>
    %312 = tpu.matmul %275, %6, %cst_67 {dimension_numbers = #tpu.dot_dimension_numbers<[1], [0], [0], [1], [0, 0, 1, 1], [], []>} : vector<2x32xf32>, vector<32x128xf32>, vector<2x128xf32> -> vector<2x128xf32>
    %313 = arith.addf %311, %312 : vector<2x128xf32>
    %314 = vector.broadcast %7 : vector<1x128xf32> to vector<2x128xf32>
    %315 = arith.addf %313, %314 : vector<2x128xf32>
    %316 = vector.extract_strided_slice %315 {offsets = [0, 0], sizes = [2, 32], strides = [1, 1]} : vector<2x128xf32> to vector<2x32xf32>
    %317 = arith.negf %316 : vector<2x32xf32>
    %318 = math.exp %317 : vector<2x32xf32>
    %cst_68 = arith.constant 1.000000e+00 : f32
    %319 = vector.broadcast %cst_68 : f32 to vector<2x32xf32>
    %320 = arith.addf %319, %318 : vector<2x32xf32>
    %321 = arith.divf %319, %320 : vector<2x32xf32>
    %322 = vector.extract_strided_slice %315 {offsets = [0, 32], sizes = [2, 32], strides = [1, 1]} : vector<2x128xf32> to vector<2x32xf32>
    %323 = arith.negf %322 : vector<2x32xf32>
    %324 = math.exp %323 : vector<2x32xf32>
    %cst_69 = arith.constant 1.000000e+00 : f32
    %325 = vector.broadcast %cst_69 : f32 to vector<2x32xf32>
    %326 = arith.addf %325, %324 : vector<2x32xf32>
    %327 = arith.divf %325, %326 : vector<2x32xf32>
    %328 = vector.extract_strided_slice %315 {offsets = [0, 64], sizes = [2, 32], strides = [1, 1]} : vector<2x128xf32> to vector<2x32xf32>
    %329 = math.tanh %328 : vector<2x32xf32>
    %330 = vector.extract_strided_slice %315 {offsets = [0, 96], sizes = [2, 32], strides = [1, 1]} : vector<2x128xf32> to vector<2x32xf32>
    %331 = arith.negf %330 : vector<2x32xf32>
    %332 = math.exp %331 : vector<2x32xf32>
    %cst_70 = arith.constant 1.000000e+00 : f32
    %333 = vector.broadcast %cst_70 : f32 to vector<2x32xf32>
    %334 = arith.addf %333, %332 : vector<2x32xf32>
    %335 = arith.divf %333, %334 : vector<2x32xf32>
    %336 = arith.mulf %327, %273 : vector<2x32xf32>
    %337 = arith.mulf %321, %329 : vector<2x32xf32>
    %338 = arith.addf %336, %337 : vector<2x32xf32>
    %339 = math.tanh %338 : vector<2x32xf32>
    %340 = arith.mulf %335, %339 : vector<2x32xf32>
    %c4_i32 = arith.constant 4 : i32
    %341 = vector.broadcast %c4_i32 : i32 to vector<2x1xi32>
    %342 = arith.cmpi eq, %8, %341 : vector<2x1xi32>
    %343 = arith.extui %342 : vector<2x1xi1> to vector<2x1xi32>
    %344 = arith.sitofp %343 : vector<2x1xi32> to vector<2x1xf32>
    %345 = vector.broadcast %344 : vector<2x1xf32> to vector<2x32xf32>
    %346 = arith.mulf %345, %340 : vector<2x32xf32>
    %347 = arith.addf %282, %346 : vector<2x32xf32>
    %348 = vector.extract_strided_slice %17 {offsets = [10, 0], sizes = [2, 128], strides = [1, 1]} : vector<16x128xf32> to vector<2x128xf32>
    %cst_71 = arith.constant dense<0.000000e+00> : vector<2x128xf32>
    %349 = tpu.matmul %310, %3, %cst_71 {dimension_numbers = #tpu.dot_dimension_numbers<[1], [0], [0], [1], [0, 0, 1, 1], [], []>} : vector<2x32xf32>, vector<32x128xf32>, vector<2x128xf32> -> vector<2x128xf32>
    %350 = arith.addf %348, %349 : vector<2x128xf32>
    %351 = vector.extract_strided_slice %350 {offsets = [0, 0], sizes = [2, 32], strides = [1, 1]} : vector<2x128xf32> to vector<2x32xf32>
    %352 = arith.negf %351 : vector<2x32xf32>
    %353 = math.exp %352 : vector<2x32xf32>
    %cst_72 = arith.constant 1.000000e+00 : f32
    %354 = vector.broadcast %cst_72 : f32 to vector<2x32xf32>
    %355 = arith.addf %354, %353 : vector<2x32xf32>
    %356 = arith.divf %354, %355 : vector<2x32xf32>
    %357 = vector.extract_strided_slice %350 {offsets = [0, 32], sizes = [2, 32], strides = [1, 1]} : vector<2x128xf32> to vector<2x32xf32>
    %358 = arith.negf %357 : vector<2x32xf32>
    %359 = math.exp %358 : vector<2x32xf32>
    %cst_73 = arith.constant 1.000000e+00 : f32
    %360 = vector.broadcast %cst_73 : f32 to vector<2x32xf32>
    %361 = arith.addf %360, %359 : vector<2x32xf32>
    %362 = arith.divf %360, %361 : vector<2x32xf32>
    %363 = vector.extract_strided_slice %350 {offsets = [0, 64], sizes = [2, 32], strides = [1, 1]} : vector<2x128xf32> to vector<2x32xf32>
    %364 = math.tanh %363 : vector<2x32xf32>
    %365 = vector.extract_strided_slice %350 {offsets = [0, 96], sizes = [2, 32], strides = [1, 1]} : vector<2x128xf32> to vector<2x32xf32>
    %366 = arith.negf %365 : vector<2x32xf32>
    %367 = math.exp %366 : vector<2x32xf32>
    %cst_74 = arith.constant 1.000000e+00 : f32
    %368 = vector.broadcast %cst_74 : f32 to vector<2x32xf32>
    %369 = arith.addf %368, %367 : vector<2x32xf32>
    %370 = arith.divf %368, %369 : vector<2x32xf32>
    %371 = arith.mulf %362, %308 : vector<2x32xf32>
    %372 = arith.mulf %356, %364 : vector<2x32xf32>
    %373 = arith.addf %371, %372 : vector<2x32xf32>
    %374 = math.tanh %373 : vector<2x32xf32>
    %375 = arith.mulf %370, %374 : vector<2x32xf32>
    %cst_75 = arith.constant dense<0.000000e+00> : vector<2x128xf32>
    %376 = tpu.matmul %375, %5, %cst_75 {dimension_numbers = #tpu.dot_dimension_numbers<[1], [0], [0], [1], [0, 0, 1, 1], [], []>} : vector<2x32xf32>, vector<32x128xf32>, vector<2x128xf32> -> vector<2x128xf32>
    %cst_76 = arith.constant dense<0.000000e+00> : vector<2x128xf32>
    %377 = tpu.matmul %340, %6, %cst_76 {dimension_numbers = #tpu.dot_dimension_numbers<[1], [0], [0], [1], [0, 0, 1, 1], [], []>} : vector<2x32xf32>, vector<32x128xf32>, vector<2x128xf32> -> vector<2x128xf32>
    %378 = arith.addf %376, %377 : vector<2x128xf32>
    %379 = vector.broadcast %7 : vector<1x128xf32> to vector<2x128xf32>
    %380 = arith.addf %378, %379 : vector<2x128xf32>
    %381 = vector.extract_strided_slice %380 {offsets = [0, 0], sizes = [2, 32], strides = [1, 1]} : vector<2x128xf32> to vector<2x32xf32>
    %382 = arith.negf %381 : vector<2x32xf32>
    %383 = math.exp %382 : vector<2x32xf32>
    %cst_77 = arith.constant 1.000000e+00 : f32
    %384 = vector.broadcast %cst_77 : f32 to vector<2x32xf32>
    %385 = arith.addf %384, %383 : vector<2x32xf32>
    %386 = arith.divf %384, %385 : vector<2x32xf32>
    %387 = vector.extract_strided_slice %380 {offsets = [0, 32], sizes = [2, 32], strides = [1, 1]} : vector<2x128xf32> to vector<2x32xf32>
    %388 = arith.negf %387 : vector<2x32xf32>
    %389 = math.exp %388 : vector<2x32xf32>
    %cst_78 = arith.constant 1.000000e+00 : f32
    %390 = vector.broadcast %cst_78 : f32 to vector<2x32xf32>
    %391 = arith.addf %390, %389 : vector<2x32xf32>
    %392 = arith.divf %390, %391 : vector<2x32xf32>
    %393 = vector.extract_strided_slice %380 {offsets = [0, 64], sizes = [2, 32], strides = [1, 1]} : vector<2x128xf32> to vector<2x32xf32>
    %394 = math.tanh %393 : vector<2x32xf32>
    %395 = vector.extract_strided_slice %380 {offsets = [0, 96], sizes = [2, 32], strides = [1, 1]} : vector<2x128xf32> to vector<2x32xf32>
    %396 = arith.negf %395 : vector<2x32xf32>
    %397 = math.exp %396 : vector<2x32xf32>
    %cst_79 = arith.constant 1.000000e+00 : f32
    %398 = vector.broadcast %cst_79 : f32 to vector<2x32xf32>
    %399 = arith.addf %398, %397 : vector<2x32xf32>
    %400 = arith.divf %398, %399 : vector<2x32xf32>
    %401 = arith.mulf %392, %338 : vector<2x32xf32>
    %402 = arith.mulf %386, %394 : vector<2x32xf32>
    %403 = arith.addf %401, %402 : vector<2x32xf32>
    %404 = math.tanh %403 : vector<2x32xf32>
    %405 = arith.mulf %400, %404 : vector<2x32xf32>
    %c5_i32 = arith.constant 5 : i32
    %406 = vector.broadcast %c5_i32 : i32 to vector<2x1xi32>
    %407 = arith.cmpi eq, %8, %406 : vector<2x1xi32>
    %408 = arith.extui %407 : vector<2x1xi1> to vector<2x1xi32>
    %409 = arith.sitofp %408 : vector<2x1xi32> to vector<2x1xf32>
    %410 = vector.broadcast %409 : vector<2x1xf32> to vector<2x32xf32>
    %411 = arith.mulf %410, %405 : vector<2x32xf32>
    %412 = arith.addf %347, %411 : vector<2x32xf32>
    %413 = vector.extract_strided_slice %17 {offsets = [12, 0], sizes = [2, 128], strides = [1, 1]} : vector<16x128xf32> to vector<2x128xf32>
    %cst_80 = arith.constant dense<0.000000e+00> : vector<2x128xf32>
    %414 = tpu.matmul %375, %3, %cst_80 {dimension_numbers = #tpu.dot_dimension_numbers<[1], [0], [0], [1], [0, 0, 1, 1], [], []>} : vector<2x32xf32>, vector<32x128xf32>, vector<2x128xf32> -> vector<2x128xf32>
    %415 = arith.addf %413, %414 : vector<2x128xf32>
    %416 = vector.extract_strided_slice %415 {offsets = [0, 0], sizes = [2, 32], strides = [1, 1]} : vector<2x128xf32> to vector<2x32xf32>
    %417 = arith.negf %416 : vector<2x32xf32>
    %418 = math.exp %417 : vector<2x32xf32>
    %cst_81 = arith.constant 1.000000e+00 : f32
    %419 = vector.broadcast %cst_81 : f32 to vector<2x32xf32>
    %420 = arith.addf %419, %418 : vector<2x32xf32>
    %421 = arith.divf %419, %420 : vector<2x32xf32>
    %422 = vector.extract_strided_slice %415 {offsets = [0, 32], sizes = [2, 32], strides = [1, 1]} : vector<2x128xf32> to vector<2x32xf32>
    %423 = arith.negf %422 : vector<2x32xf32>
    %424 = math.exp %423 : vector<2x32xf32>
    %cst_82 = arith.constant 1.000000e+00 : f32
    %425 = vector.broadcast %cst_82 : f32 to vector<2x32xf32>
    %426 = arith.addf %425, %424 : vector<2x32xf32>
    %427 = arith.divf %425, %426 : vector<2x32xf32>
    %428 = vector.extract_strided_slice %415 {offsets = [0, 64], sizes = [2, 32], strides = [1, 1]} : vector<2x128xf32> to vector<2x32xf32>
    %429 = math.tanh %428 : vector<2x32xf32>
    %430 = vector.extract_strided_slice %415 {offsets = [0, 96], sizes = [2, 32], strides = [1, 1]} : vector<2x128xf32> to vector<2x32xf32>
    %431 = arith.negf %430 : vector<2x32xf32>
    %432 = math.exp %431 : vector<2x32xf32>
    %cst_83 = arith.constant 1.000000e+00 : f32
    %433 = vector.broadcast %cst_83 : f32 to vector<2x32xf32>
    %434 = arith.addf %433, %432 : vector<2x32xf32>
    %435 = arith.divf %433, %434 : vector<2x32xf32>
    %436 = arith.mulf %427, %373 : vector<2x32xf32>
    %437 = arith.mulf %421, %429 : vector<2x32xf32>
    %438 = arith.addf %436, %437 : vector<2x32xf32>
    %439 = math.tanh %438 : vector<2x32xf32>
    %440 = arith.mulf %435, %439 : vector<2x32xf32>
    %cst_84 = arith.constant dense<0.000000e+00> : vector<2x128xf32>
    %441 = tpu.matmul %440, %5, %cst_84 {dimension_numbers = #tpu.dot_dimension_numbers<[1], [0], [0], [1], [0, 0, 1, 1], [], []>} : vector<2x32xf32>, vector<32x128xf32>, vector<2x128xf32> -> vector<2x128xf32>
    %cst_85 = arith.constant dense<0.000000e+00> : vector<2x128xf32>
    %442 = tpu.matmul %405, %6, %cst_85 {dimension_numbers = #tpu.dot_dimension_numbers<[1], [0], [0], [1], [0, 0, 1, 1], [], []>} : vector<2x32xf32>, vector<32x128xf32>, vector<2x128xf32> -> vector<2x128xf32>
    %443 = arith.addf %441, %442 : vector<2x128xf32>
    %444 = vector.broadcast %7 : vector<1x128xf32> to vector<2x128xf32>
    %445 = arith.addf %443, %444 : vector<2x128xf32>
    %446 = vector.extract_strided_slice %445 {offsets = [0, 0], sizes = [2, 32], strides = [1, 1]} : vector<2x128xf32> to vector<2x32xf32>
    %447 = arith.negf %446 : vector<2x32xf32>
    %448 = math.exp %447 : vector<2x32xf32>
    %cst_86 = arith.constant 1.000000e+00 : f32
    %449 = vector.broadcast %cst_86 : f32 to vector<2x32xf32>
    %450 = arith.addf %449, %448 : vector<2x32xf32>
    %451 = arith.divf %449, %450 : vector<2x32xf32>
    %452 = vector.extract_strided_slice %445 {offsets = [0, 32], sizes = [2, 32], strides = [1, 1]} : vector<2x128xf32> to vector<2x32xf32>
    %453 = arith.negf %452 : vector<2x32xf32>
    %454 = math.exp %453 : vector<2x32xf32>
    %cst_87 = arith.constant 1.000000e+00 : f32
    %455 = vector.broadcast %cst_87 : f32 to vector<2x32xf32>
    %456 = arith.addf %455, %454 : vector<2x32xf32>
    %457 = arith.divf %455, %456 : vector<2x32xf32>
    %458 = vector.extract_strided_slice %445 {offsets = [0, 64], sizes = [2, 32], strides = [1, 1]} : vector<2x128xf32> to vector<2x32xf32>
    %459 = math.tanh %458 : vector<2x32xf32>
    %460 = vector.extract_strided_slice %445 {offsets = [0, 96], sizes = [2, 32], strides = [1, 1]} : vector<2x128xf32> to vector<2x32xf32>
    %461 = arith.negf %460 : vector<2x32xf32>
    %462 = math.exp %461 : vector<2x32xf32>
    %cst_88 = arith.constant 1.000000e+00 : f32
    %463 = vector.broadcast %cst_88 : f32 to vector<2x32xf32>
    %464 = arith.addf %463, %462 : vector<2x32xf32>
    %465 = arith.divf %463, %464 : vector<2x32xf32>
    %466 = arith.mulf %457, %403 : vector<2x32xf32>
    %467 = arith.mulf %451, %459 : vector<2x32xf32>
    %468 = arith.addf %466, %467 : vector<2x32xf32>
    %469 = math.tanh %468 : vector<2x32xf32>
    %470 = arith.mulf %465, %469 : vector<2x32xf32>
    %c6_i32 = arith.constant 6 : i32
    %471 = vector.broadcast %c6_i32 : i32 to vector<2x1xi32>
    %472 = arith.cmpi eq, %8, %471 : vector<2x1xi32>
    %473 = arith.extui %472 : vector<2x1xi1> to vector<2x1xi32>
    %474 = arith.sitofp %473 : vector<2x1xi32> to vector<2x1xf32>
    %475 = vector.broadcast %474 : vector<2x1xf32> to vector<2x32xf32>
    %476 = arith.mulf %475, %470 : vector<2x32xf32>
    %477 = arith.addf %412, %476 : vector<2x32xf32>
    %478 = vector.extract_strided_slice %17 {offsets = [14, 0], sizes = [2, 128], strides = [1, 1]} : vector<16x128xf32> to vector<2x128xf32>
    %cst_89 = arith.constant dense<0.000000e+00> : vector<2x128xf32>
    %479 = tpu.matmul %440, %3, %cst_89 {dimension_numbers = #tpu.dot_dimension_numbers<[1], [0], [0], [1], [0, 0, 1, 1], [], []>} : vector<2x32xf32>, vector<32x128xf32>, vector<2x128xf32> -> vector<2x128xf32>
    %480 = arith.addf %478, %479 : vector<2x128xf32>
    %481 = vector.extract_strided_slice %480 {offsets = [0, 0], sizes = [2, 32], strides = [1, 1]} : vector<2x128xf32> to vector<2x32xf32>
    %482 = arith.negf %481 : vector<2x32xf32>
    %483 = math.exp %482 : vector<2x32xf32>
    %cst_90 = arith.constant 1.000000e+00 : f32
    %484 = vector.broadcast %cst_90 : f32 to vector<2x32xf32>
    %485 = arith.addf %484, %483 : vector<2x32xf32>
    %486 = arith.divf %484, %485 : vector<2x32xf32>
    %487 = vector.extract_strided_slice %480 {offsets = [0, 32], sizes = [2, 32], strides = [1, 1]} : vector<2x128xf32> to vector<2x32xf32>
    %488 = arith.negf %487 : vector<2x32xf32>
    %489 = math.exp %488 : vector<2x32xf32>
    %cst_91 = arith.constant 1.000000e+00 : f32
    %490 = vector.broadcast %cst_91 : f32 to vector<2x32xf32>
    %491 = arith.addf %490, %489 : vector<2x32xf32>
    %492 = arith.divf %490, %491 : vector<2x32xf32>
    %493 = vector.extract_strided_slice %480 {offsets = [0, 64], sizes = [2, 32], strides = [1, 1]} : vector<2x128xf32> to vector<2x32xf32>
    %494 = math.tanh %493 : vector<2x32xf32>
    %495 = vector.extract_strided_slice %480 {offsets = [0, 96], sizes = [2, 32], strides = [1, 1]} : vector<2x128xf32> to vector<2x32xf32>
    %496 = arith.negf %495 : vector<2x32xf32>
    %497 = math.exp %496 : vector<2x32xf32>
    %cst_92 = arith.constant 1.000000e+00 : f32
    %498 = vector.broadcast %cst_92 : f32 to vector<2x32xf32>
    %499 = arith.addf %498, %497 : vector<2x32xf32>
    %500 = arith.divf %498, %499 : vector<2x32xf32>
    %501 = arith.mulf %492, %438 : vector<2x32xf32>
    %502 = arith.mulf %486, %494 : vector<2x32xf32>
    %503 = arith.addf %501, %502 : vector<2x32xf32>
    %504 = math.tanh %503 : vector<2x32xf32>
    %505 = arith.mulf %500, %504 : vector<2x32xf32>
    %cst_93 = arith.constant dense<0.000000e+00> : vector<2x128xf32>
    %506 = tpu.matmul %505, %5, %cst_93 {dimension_numbers = #tpu.dot_dimension_numbers<[1], [0], [0], [1], [0, 0, 1, 1], [], []>} : vector<2x32xf32>, vector<32x128xf32>, vector<2x128xf32> -> vector<2x128xf32>
    %cst_94 = arith.constant dense<0.000000e+00> : vector<2x128xf32>
    %507 = tpu.matmul %470, %6, %cst_94 {dimension_numbers = #tpu.dot_dimension_numbers<[1], [0], [0], [1], [0, 0, 1, 1], [], []>} : vector<2x32xf32>, vector<32x128xf32>, vector<2x128xf32> -> vector<2x128xf32>
    %508 = arith.addf %506, %507 : vector<2x128xf32>
    %509 = vector.broadcast %7 : vector<1x128xf32> to vector<2x128xf32>
    %510 = arith.addf %508, %509 : vector<2x128xf32>
    %511 = vector.extract_strided_slice %510 {offsets = [0, 0], sizes = [2, 32], strides = [1, 1]} : vector<2x128xf32> to vector<2x32xf32>
    %512 = arith.negf %511 : vector<2x32xf32>
    %513 = math.exp %512 : vector<2x32xf32>
    %cst_95 = arith.constant 1.000000e+00 : f32
    %514 = vector.broadcast %cst_95 : f32 to vector<2x32xf32>
    %515 = arith.addf %514, %513 : vector<2x32xf32>
    %516 = arith.divf %514, %515 : vector<2x32xf32>
    %517 = vector.extract_strided_slice %510 {offsets = [0, 32], sizes = [2, 32], strides = [1, 1]} : vector<2x128xf32> to vector<2x32xf32>
    %518 = arith.negf %517 : vector<2x32xf32>
    %519 = math.exp %518 : vector<2x32xf32>
    %cst_96 = arith.constant 1.000000e+00 : f32
    %520 = vector.broadcast %cst_96 : f32 to vector<2x32xf32>
    %521 = arith.addf %520, %519 : vector<2x32xf32>
    %522 = arith.divf %520, %521 : vector<2x32xf32>
    %523 = vector.extract_strided_slice %510 {offsets = [0, 64], sizes = [2, 32], strides = [1, 1]} : vector<2x128xf32> to vector<2x32xf32>
    %524 = math.tanh %523 : vector<2x32xf32>
    %525 = vector.extract_strided_slice %510 {offsets = [0, 96], sizes = [2, 32], strides = [1, 1]} : vector<2x128xf32> to vector<2x32xf32>
    %526 = arith.negf %525 : vector<2x32xf32>
    %527 = math.exp %526 : vector<2x32xf32>
    %cst_97 = arith.constant 1.000000e+00 : f32
    %528 = vector.broadcast %cst_97 : f32 to vector<2x32xf32>
    %529 = arith.addf %528, %527 : vector<2x32xf32>
    %530 = arith.divf %528, %529 : vector<2x32xf32>
    %531 = arith.mulf %522, %468 : vector<2x32xf32>
    %532 = arith.mulf %516, %524 : vector<2x32xf32>
    %533 = arith.addf %531, %532 : vector<2x32xf32>
    %534 = math.tanh %533 : vector<2x32xf32>
    %535 = arith.mulf %530, %534 : vector<2x32xf32>
    %c7_i32 = arith.constant 7 : i32
    %536 = vector.broadcast %c7_i32 : i32 to vector<2x1xi32>
    %537 = arith.cmpi eq, %8, %536 : vector<2x1xi32>
    %538 = arith.extui %537 : vector<2x1xi1> to vector<2x1xi32>
    %539 = arith.sitofp %538 : vector<2x1xi32> to vector<2x1xf32>
    %540 = vector.broadcast %539 : vector<2x1xf32> to vector<2x32xf32>
    %541 = arith.mulf %540, %535 : vector<2x32xf32>
    %542 = arith.addf %477, %541 : vector<2x32xf32>
    %c0_98 = arith.constant 0 : index
    %c0_99 = arith.constant 0 : index
    %543 = vector.load %arg10[%c0_98, %c0_99] : memref<32x1xf32, #tpu.memory_space<vmem>>, vector<32x1xf32>
    %cst_100 = arith.constant dense<0.000000e+00> : vector<2x1xf32>
    %544 = tpu.matmul %542, %543, %cst_100 {dimension_numbers = #tpu.dot_dimension_numbers<[1], [0], [0], [1], [0, 0, 1, 1], [], []>} : vector<2x32xf32>, vector<32x1xf32>, vector<2x1xf32> -> vector<2x1xf32>
    %c0_101 = arith.constant 0 : index
    %c0_102 = arith.constant 0 : index
    %545 = vector.load %arg11[%c0_101, %c0_102] : memref<1x1xf32, #tpu.memory_space<vmem>>, vector<1x1xf32>
    %546 = vector.broadcast %545 : vector<1x1xf32> to vector<2x1xf32>
    %547 = arith.addf %544, %546 : vector<2x1xf32>
    %c0_103 = arith.constant 0 : index
    %c0_104 = arith.constant 0 : index
    %548 = vector.load %arg12[%c0_103, %c0_104] : memref<2x1xf32, #tpu.memory_space<vmem>>, vector<2x1xf32>
    tpu.vector_store %arg12[%c0_103, %c0_104], %547 {strides = array<i32>} : memref<2x1xf32, #tpu.memory_space<vmem>>, vector<2x1xf32>,
    return
  }
}

</mosaic_0001>

<bundles_post_ra>
// kernel: tpu_custom_call.1
= control target key start
LH: loop header
LB: loop body
LE: loop exit
PB: predicated region body
PF: predicated region fallthrough
CT: control target
= control target key end

     0   :  { %s4151_s0 = inlined_call_operand.hbm [shape: f32[16,12], index: 0, kind: input, shape index: {}]   ;;  %s4152_s1 = inlined_call_operand.vmem [shape: s32[2,1], index: 1, kind: input, shape index: {}]   ;;  %s4153_s2 = inlined_call_operand.hbm [shape: f32[12,32], index: 2, kind: input, shape index: {}]   ;;  %s4154_s3 = inlined_call_operand.vmem [shape: f32[1,32], index: 3, kind: input, shape index: {}]   ;;  %s4155_s4 = inlined_call_operand.vmem [shape: f32[32,128], index: 4, kind: input, shape index: {}]   ;;  %s4156_s5 = inlined_call_operand.hbm [shape: f32[32,128], index: 5, kind: input, shape index: {}]   ;;  %s4157_s6 = inlined_call_operand.vmem [shape: f32[1,128], index: 6, kind: input, shape index: {}]   ;;  %s4158_s7 = inlined_call_operand.vmem [shape: f32[32,128], index: 7, kind: input, shape index: {}]   ;;  %s4159_s8 = inlined_call_operand.hbm [shape: f32[32,128], index: 8, kind: input, shape index: {}]   ;;  %s4160_s9 = inlined_call_operand.vmem [shape: f32[1,128], index: 9, kind: input, shape index: {}]   ;;  %s4161_s10 = inlined_call_operand.vmem [shape: f32[32,1], index: 10, kind: input, shape index: {}]   ;;  %s4162_s11 = inlined_call_operand.<no memory space> [shape: f32[1,1], index: 11, kind: input, shape index: {}]   ;;  %s4163_s12 = inlined_call_operand.vmem [shape: f32[2,1], index: 12, kind: output, shape index: {}]  }
   0x1   :  { %v17_v0 = vstv %s4162_s11 }
   0x2   :  { %18 = vst [vmem:[#allocation2] sm:$0x1] %v17_v0 }
   0x3   :  { %19 = vsyncpa [#allocation4], 0 }
   0x4   :  { %20 = vsyncpa [#allocation6], 0 }
   0x5   :  { %21 = vsyncpa [#allocation9], 0  ;;  %s3578_s23 = smov [#allocation5]   ;;  %s3579_s25 = smov [#allocation3]  }
   0x6   :  { %s41_s24 = sshll.u32 %s3578_s23, 4  ;;  %s27_s26 = sshll.u32 %s3579_s25, 4  ;;  %s42_s24 = int_to_ptr.vmem [resolvable:$true] %s41_s24  ;;  %s3659_s26 = int_to_ptr.vmem [resolvable:$true] %s27_s26 }
   0x7   :  { %s3484_s29 = scalar_lea.hbm %s4153_s2, 256 }
   0x8   :  { %p3485_p0 = scmp.ne.s32.totalorder %s4153_s2, %s3484_s29  ;;  %p3488_p1 = scmp.lt.u32.totalorder %s3484_s29, %s4153_s2 }
   0xa   :  { %p3490_p2 = pnand %p3488_p1, %p3485_p0 }
   0xc   :  { %3493 = shalt.err (!%p3490_p2)
}
   0xd   :  { %s3494_s15 = scalar_lea.vmem %s42_s24, 256  ;;  %p3499_p4 = scmp.lt.s32.totalorder %s42_s24, %s42_s24 }
   0xe   :  { %p3495_p3 = scmp.ne.s32.totalorder %s42_s24, %s3494_s15  ;;  %p3500_p5 = scmp.lt.s32.totalorder %s3494_s15, %s3494_s15 }
  0x10   :  { %p3501_p6 = por %p3500_p5, %p3499_p4 }
  0x12   :  { %p3502_p7 = pnand %p3501_p6, %p3495_p3 }
  0x14   :  { %3505 = shalt.err (!%p3502_p7)
}
  0x15   :  { %s3580_s16 = smov 128   ;;  %s3581_s17 = smov 8  }
  0x16   :  { %47 = dma.hbm_to_vmem [thread:$0]  %s4153_s2, 256, %s42_s24, [#allocation6], %s3580_s16, %s3580_s16, %s3581_s17  }
  0x17   :  { %s3506_s22 = scalar_lea.hbm %s4151_s0, 256 }
  0x18   :  { %p3507_p8 = scmp.ne.s32.totalorder %s4151_s0, %s3506_s22  ;;  %p3510_p9 = scmp.lt.u32.totalorder %s3506_s22, %s4151_s0 }
  0x1a   :  { %p3512_p10 = pnand %p3510_p9, %p3507_p8 }
  0x1c   :  { %3515 = shalt.err (!%p3512_p10)
}
  0x1d   :  { %s3516_s29 = scalar_lea.vmem %s3659_s26, 256  ;;  %p3521_p12 = scmp.lt.s32.totalorder %s3659_s26, %s3659_s26 }
  0x1e   :  { %p3517_p11 = scmp.ne.s32.totalorder %s3659_s26, %s3516_s29  ;;  %p3522_p13 = scmp.lt.s32.totalorder %s3516_s29, %s3516_s29 }
  0x20   :  { %p3523_p0 = por %p3522_p13, %p3521_p12 }
  0x22   :  { %p3524_p1 = pnand %p3523_p0, %p3517_p11 }
  0x24   :  { %3527 = shalt.err (!%p3524_p1)
}
  0x25   :  { %33 = dma.hbm_to_vmem [thread:$0]  %s4151_s0, 256, %s3659_s26, [#allocation4], %s3580_s16, %s3580_s16, %s3581_s17  }
  0x26   :  { %s3582_s30 = smov [#allocation7]   ;;  %s3583_s11 = smov [#allocation8]  }
  0x27   :  { %s57_s13 = sshll.u32 %s3582_s30, 4  ;;  %s73_s14 = sshll.u32 %s3583_s11, 4  ;;  %s58_s13 = int_to_ptr.vmem [resolvable:$true] %s57_s13  ;;  %s3696_s14 = int_to_ptr.vmem [resolvable:$true] %s73_s14 }
  0x28   :  { %s3528_s19 = scalar_lea.hbm %s4156_s5, 512 }
  0x29   :  { %p3529_p2 = scmp.ne.s32.totalorder %s4156_s5, %s3528_s19  ;;  %p3532_p3 = scmp.lt.u32.totalorder %s3528_s19, %s4156_s5 }
  0x2b   :  { %p3534_p4 = pnand %p3532_p3, %p3529_p2 }
  0x2d   :  { %3537 = shalt.err (!%p3534_p4)
}
  0x2e   :  { %s3538_s0 = scalar_lea.vmem %s58_s13, 512  ;;  %p3543_p6 = scmp.lt.s32.totalorder %s58_s13, %s58_s13 }
  0x2f   :  { %p3539_p5 = scmp.ne.s32.totalorder %s58_s13, %s3538_s0  ;;  %p3544_p7 = scmp.lt.s32.totalorder %s3538_s0, %s3538_s0 }
  0x31   :  { %p3545_p8 = por %p3544_p7, %p3543_p6 }
  0x33   :  { %p3546_p9 = pnand %p3545_p8, %p3539_p5 }
  0x35   :  { %3549 = shalt.err (!%p3546_p9)
}
  0x36   :  { %63 = dma.hbm_to_vmem [thread:$0]  %s4156_s5, 512, %s58_s13, [#allocation6], %s3580_s16, %s3580_s16, %s3581_s17  }
  0x37   :  { %s3550_s29 = scalar_lea.hbm %s4159_s8, 512 }
  0x38   :  { %p3551_p10 = scmp.ne.s32.totalorder %s4159_s8, %s3550_s29  ;;  %p3554_p11 = scmp.lt.u32.totalorder %s3550_s29, %s4159_s8 }
  0x3a   :  { %p3556_p12 = pnand %p3554_p11, %p3551_p10 }
  0x3c   :  { %3559 = shalt.err (!%p3556_p12)
}
  0x3d   :  { %s3560_s15 = scalar_lea.vmem %s3696_s14, 512  ;;  %p3565_p0 = scmp.lt.s32.totalorder %s3696_s14, %s3696_s14 }
  0x3e   :  { %p3561_p13 = scmp.ne.s32.totalorder %s3696_s14, %s3560_s15  ;;  %p3566_p1 = scmp.lt.s32.totalorder %s3560_s15, %s3560_s15 }
  0x40   :  { %p3567_p2 = por %p3566_p1, %p3565_p0 }
  0x42   :  { %p3568_p3 = pnand %p3567_p2, %p3561_p13 }
  0x44   :  { %3571 = shalt.err (!%p3568_p3)
}
  0x45   :  { %79 = dma.hbm_to_vmem [thread:$0]  %s4159_s8, 512, %s3696_s14, [#allocation9], %s3580_s16, %s3580_s16, %s3581_s17  }
  0x46   :  { %3572 = dma.done.wait [#allocation4], 256  }
  0x47   :  { %3573 = vsyncadd [#allocation4], 4294967040 }
  0x48   :  { %3574 = dma.done.wait [#allocation6], 768  }
  0x49   :  { %3575 = vsyncadd [#allocation6], 4294966528 }
  0x4a   :  { %3576 = dma.done.wait [#allocation9], 512  }
  0x4b   :  { %3577 = vsyncadd [#allocation9], 4294966784  ;;  %vm135_vm0 = vcmask 1043456   ;;  %vm128_vm1 = vcmask 97280   ;;  %vm3584_vm2 = vmmov 1   ;;  %v98_v1 = vld [vmem:[#allocation5] sm:$0xff] }
  0x4c   :  { %vm3173_vm3 = vmpackc.low %vm135_vm0, %vm3584_vm2  ;;  %v99_v2 = vld [vmem:[#allocation5 + $0x8] sm:$0xf]  ;;  %v120_v3 = vld [vmem:[#allocation3] sm:$0xff]  ;;  %v3585_v14 = vmov 0.0|0.0   ;;  %vm3586_vm4 = vmmov 0   ;;  %v3587_v19 = vmov 0.0  }
  0x4d   :  { %v3172_v4 = vpack.c.bf16 %v99_v2, %v98_v1  ;;  %2883 = vmatprep.mubr.msk.f32.mxu0 %vm128_vm1, %v120_v3  ;;  %v101_v5 = vld [vmem:[%s4155_s4] sm:$0xff]  ;;  %v102_v6 = vld [vmem:[%s4155_s4 + $0x8] sm:$0xff]  ;;  %v103_v12 = vld [vmem:[%s4155_s4 + $0x10] sm:$0xff]  ;;  %vm222_vm5 = vcmask 261120   ;;  %vm2679_vm14 = vcmask 1024  }
  0x4e   :  { %v3178_v7 = vpack.c.bf16 %v102_v6, %v101_v5  ;;  %v121_v8 = vld [vmem:[#allocation3 + $0x8] sm:$0xff]  ;;  %v105_v9 = vld [vmem:[#allocation7] sm:$0xff]  ;;  %v104_v13 = vld [vmem:[%s4155_s4 + $0x18] sm:$0xff] }
  0x4f   :  { %3174 = vmatprep.subr.msk.bf16.mxu0 %vm3173_vm3, %v3172_v4  ;;  %v106_v10 = vld [vmem:[#allocation7 + $0x8] sm:$0xff]  ;;  %v3182_v15 = vpack.c.bf16 %v104_v13, %v103_v12  ;;  %v107_v16 = vld [vmem:[#allocation7 + $0x10] sm:$0xff]  ;;  %v108_v17 = vld [vmem:[#allocation7 + $0x18] sm:$0xff] }
  0x50   :  { %3177 = vmatpush3.bf16.msk.msra.mxu0 %vm3173_vm3, %v3172_v4  ;;  %3179 = vmatprep.subr.bf16.mxu1 %v3178_v7  ;;  %v3741_v11 = vpack.c.bf16 %v106_v10, %v105_v9  ;;  %v3752_v18 = vpack.c.bf16 %v108_v17, %v107_v16  ;;  %v2688_v20 = vld [vmem:[%s4154_s3] ss:$0 sm:$0xff]  ;;  %s3588_s3 = smov 64   ;;  %v114_v45 = vld [vmem:[#allocation8] sm:$0xff]  ;;  %v115_v46 = vld [vmem:[#allocation8 + $0x8] sm:$0xff] }
  0x51   :  { %3181 = vmatpush3.bf16.msra.mxu1 %v3178_v7  ;;  %3186 = vmatprep.subr.bf16.mxu0 %v3585_v14  ;;  %v2692_v29 = vld [vmem:[%s4157_s6] ss:$0 sm:$0xff]  ;;  %s3589_s6 = smov 32   ;;  %v116_v47 = vld [vmem:[#allocation8 + $0x10] sm:$0xff]  ;;  %v3782_v48 = vpack.c.bf16 %v115_v46, %v114_v45  ;;  %v111_v51 = vld [vmem:[%s4158_s7 + $0x8] sm:$0xff] }
  0x52   :  { %3183 = vmatprep.subr.bf16.mxu1 %v3182_v15  ;;  %v117_v49 = vld [vmem:[#allocation8 + $0x18] sm:$0xff]  ;;  %v112_v53 = vld [vmem:[%s4158_s7 + $0x10] sm:$0xff] }
  0x53   :  { %2884 = vmatmul.mubr.msk.f32.vlgmr.msra.gmra.mrb[0].mxu0 %vm128_vm1, %v121_v8  ;;  %v110_v50 = vld [vmem:[%s4158_s7] sm:$0xff]  ;;  %v113_v54 = vld [vmem:[%s4158_s7 + $0x18] sm:$0xff]  ;;  %v3799_v55 = vpack.c.bf16 %v117_v49, %v116_v47 }
  0x54   :  { %3188 = vmatpush3.bf16.msra.mxu0 %v3741_v11  ;;  %2905 = vmatprep.mubr.msk.f32.mxu0 %vm3586_vm4, %v3587_v19  ;;  %v3790_v52 = vpack.c.bf16 %v111_v51, %v110_v50  ;;  %v3803_v56 = vpack.c.bf16 %v113_v54, %v112_v53  ;;  %v3836_v63 = vld [vmem:[%s4160_s9] ss:$0 sm:$0xff] }
  0x55   :  { %3189 = vmatprep.subr.bf16.mxu0 %v3585_v14  ;;  %3185 = vmatpush3.bf16.msra.mxu1 %v3182_v15 }
  0x56   :  { %3192 = vmatprep.subr.bf16.mxu1 %v3585_v14 }
  0x58   :  { %3191 = vmatpush3.bf16.msra.mxu0 %v3752_v18 }
  0x59   :  { %3198 = vmatprep.subr.bf16.mxu0 %v3585_v14 }
  0x5b   :  { %2906 = vmatmul.mubr.f32.vlgmr.msra.gmra.mrb[2].mxu0 %v3587_v19 }
  0x5c   :  { %2927 = vmatprep.mubr.msk.f32.mxu0 %vm3586_vm4, %v3587_v19  ;;  %3200 = vmatpush3.bf16.msra.mxu0 %v3790_v52 }
  0x5d   :  { %3201 = vmatprep.subr.bf16.mxu0 %v3585_v14 }
  0x60   :  { %3203 = vmatpush3.bf16.msra.mxu0 %v3803_v56 }
  0x61   :  { %3210 = vmatprep.subr.bf16.mxu0 %v3585_v14 }
 0x126   :  { %v2885_v21 = vpop.f32.mrb[0].mxu0 }
 0x127   :  { %v211_v22 = vadd.f32 %v2885_v21, %v2688_v20  ;;  %v205_v23 = vpop.f32.mrb[1].mxu0 }
 0x128   :  { %v206_v24 = vadd.f32 %v2688_v20, %v205_v23 }
 0x129   :  { %v215_v26 = vmax.f32 %v211_v22, 0.0 }
 0x12a   :  { %v214_v25 = vmax.f32 %v206_v24, 0.0 }
 0x12c   :  { %2894 = vmatprep.mubr.msk.f32.mxu1 %vm222_vm5, %v214_v25 }
 0x12d   :  { %2895 = vmatmul.mubr.msk.f32.vlgmr.msra.gmra.mrb[0].mxu1 %vm222_vm5, %v215_v26 }
 0x12e   :  { %2916 = vmatprep.mubr.msk.f32.mxu1 %vm3586_vm4, %v3587_v19  ;;  %v373_v27 = vpop.f32.mrb[2].mxu0  ;;  %3194 = vmatpush3.bf16.msra.mxu1 %v3782_v48 }
 0x12f   :  { %v2907_v28 = vpop.f32.mrb[3].mxu0  ;;  %3195 = vmatprep.subr.bf16.mxu1 %v3585_v14 }
 0x132   :  { %3197 = vmatpush3.bf16.msra.mxu1 %v3799_v55 }
 0x133   :  { %3204 = vmatprep.subr.bf16.mxu1 %v3585_v14 }
 0x135   :  { %2917 = vmatmul.mubr.f32.vlgmr.msra.gmra.mrb[2].mxu1 %v3587_v19 }
 0x136   :  { %3206 = vmatpush3.bf16.msra.mxu1 %v3741_v11  ;;  %2938 = vmatprep.mubr.msk.f32.mxu1 %vm3586_vm4, %v3587_v19 }
 0x137   :  { %3207 = vmatprep.subr.bf16.mxu1 %v3585_v14 }
 0x13a   :  { %3209 = vmatpush3.bf16.msra.mxu1 %v3752_v18 }
 0x13b   :  { %3216 = vmatprep.subr.bf16.mxu1 %v3585_v14 }
 0x200   :  { %v2896_v30 = vpop.f32.mrb[0].mxu1 }
 0x201   :  { %v3772_v31 = vadd.f32 %v2896_v30, %v2692_v29  ;;  %v295_v32 = vpop.f32.mrb[1].mxu1 }
 0x202   :  { %v3774_v33 = vadd.f32 %v2692_v29, %v295_v32 }
 0x204   :  { %v377_v34 = vadd.f32 %v373_v27, %v3774_v33 }
 0x206   :  { %3356 = vtanh.f32 %v377_v34  ;;  %v2695_v36 = vmul.f32 -1.442695, %v377_v34 }
 0x208   :  { %3358 = vpow2.f32 %v2695_v36  ;;  %v468_v60 = vpop.f32.mrb[2].mxu1 }
 0x209   :  { %v2918_v61 = vpop.f32.mrb[3].mxu1 }
 0x210   :  { %v3357_v35 = vpop.eup %3356 }
 0x211   :  { %387 = vrot.lane.b32.xlu0 %v3357_v35, %s3588_s3 }
 0x212   :  { %v3359_v37 = vpop.eup %3358 }
 0x213   :  { %v381_v38 = vadd.f32 1.0, %v3359_v37 }
 0x215   :  { %3360 = vrcp.f32 %v381_v38 }
 0x21f   :  { %v3361_v39 = vpop.eup %3360 }
 0x220   :  { %v385_v42 = vmul.f32 0.0, %v3361_v39 }
 0x283   :  { %v388_v40 = vpop.permute.xlu0 %387 }
 0x284   :  { %v390_v41 = vmul.f32 %v3361_v39, %v388_v40 }
 0x286   :  { %392 = vrot.lane.b32.xlu0 %v390_v41, %s3589_s6 }
 0x2f8   :  { %v393_v43 = vpop.permute.xlu0 %392 }
 0x2f9   :  { %v3779_v44 = vadd.f32 %v393_v43, %v385_v42 }
 0x2fb   :  { %3362 = vtanh.f32 %v3779_v44  ;;  %v670_v26 = vrot.slane %v3779_v44, 6 }
 0x305   :  { %v3363_v57 = vpop.eup %3362 }
 0x306   :  { %398 = vrot.lane.b32.xlu1 %v3363_v57, %s3588_s3 }
 0x378   :  { %v399_v58 = vpop.permute.xlu1 %398 }
 0x379   :  { %v401_v59 = vmul.f32 %v3361_v39, %v399_v58 }
 0x37b   :  { %473 = vrot.lane.b32.xlu1 %v401_v59, %s3589_s6 }
 0x3ed   :  { %v474_v62 = vpop.permute.xlu1 %473 }
 0x3ee   :  { %2928 = vmatmul.mubr.msk.f32.vlgmr.msra.gmra.mrb[4].mxu0 %vm222_vm5, %v474_v62  ;;  %2939 = vmatmul.mubr.msk.f32.vlgmr.msra.gmra.mrb[4].mxu1 %vm222_vm5, %v474_v62 }
 0x3ef   :  { %3212 = vmatpush3.bf16.msra.mxu0 %v3782_v48  ;;  %3218 = vmatpush3.bf16.msra.mxu1 %v3790_v52 }
 0x3f0   :  { %3213 = vmatprep.subr.bf16.mxu0 %v3585_v14  ;;  %3219 = vmatprep.subr.bf16.mxu1 %v3585_v14 }
 0x3f1   :  { %2949 = vmatprep.mubr.msk.f32.mxu0 %vm3586_vm4, %v3587_v19  ;;  %2960 = vmatprep.mubr.msk.f32.mxu1 %vm3586_vm4, %v3587_v19 }
 0x3f3   :  { %3215 = vmatpush3.bf16.msra.mxu0 %v3799_v55  ;;  %3221 = vmatpush3.bf16.msra.mxu1 %v3803_v56 }
 0x3f4   :  { %3222 = vmatprep.subr.bf16.mxu0 %v3585_v14  ;;  %3228 = vmatprep.subr.bf16.mxu1 %v3585_v14 }
 0x4c1   :  { %v543_v0 = vpop.f32.mrb[4].mxu0  ;;  %v654_v1 = vpop.f32.mrb[4].mxu1 }
 0x4c2   :  { %v544_v2 = vadd.f32 %v543_v0, %v468_v60  ;;  %v659_v3 = vrot.slane %v654_v1, 6  ;;  %v2929_v4 = vpop.f32.mrb[5].mxu0  ;;  %v2940_v5 = vpop.f32.mrb[5].mxu1 }
 0x4c4   :  { %v553_v6 = vadd.f32 %v3836_v63, %v544_v2  ;;  %v661_v7 = vadd.f32 %v659_v3, %v3774_v33 }
 0x4c6   :  { %3364 = vtanh.f32 %v553_v6  ;;  %v2698_v10 = vmul.f32 -1.442695, %v553_v6  ;;  %v2701_v12 = vmul.f32 -1.442695, %v661_v7 }
 0x4c7   :  { %3366 = vtanh.f32 %v661_v7 }
 0x4c8   :  { %3368 = vpow2.f32 %v2698_v10 }
 0x4c9   :  { %3370 = vpow2.f32 %v2701_v12 }
 0x4d0   :  { %v3365_v8 = vpop.eup %3364 }
 0x4d1   :  { %v3367_v9 = vpop.eup %3366  ;;  %563 = vrot.lane.b32.xlu0 %v3365_v8, %s3588_s3 }
 0x4d2   :  { %674 = vrot.lane.b32.xlu1 %v3367_v9, %s3588_s3  ;;  %v3369_v13 = vpop.eup %3368 }
 0x4d3   :  { %v3371_v15 = vpop.eup %3370  ;;  %v557_v16 = vadd.f32 1.0, %v3369_v13 }
 0x4d4   :  { %v665_v17 = vadd.f32 1.0, %v3371_v15 }
 0x4d5   :  { %3372 = vrcp.f32 %v557_v16 }
 0x4d6   :  { %3374 = vrcp.f32 %v665_v17 }
 0x4df   :  { %v3373_v20 = vpop.eup %3372 }
 0x4e0   :  { %v3375_v22 = vpop.eup %3374  ;;  %v561_v27 = vmul.f32 0.0, %v3373_v20 }
 0x4e1   :  { %v672_v28 = vmul.f32 %v3375_v22, %v670_v26 }
 0x543   :  { %v564_v21 = vpop.permute.xlu0 %563 }
 0x544   :  { %v675_v23 = vpop.permute.xlu1 %674  ;;  %v566_v24 = vmul.f32 %v3373_v20, %v564_v21 }
 0x545   :  { %v677_v25 = vmul.f32 %v3375_v22, %v675_v23 }
 0x546   :  { %568 = vrot.lane.b32.xlu0 %v566_v24, %s3589_s6 }
 0x547   :  { %679 = vrot.lane.b32.xlu1 %v677_v25, %s3589_s6 }
 0x5b8   :  { %v569_v29 = vpop.permute.xlu0 %568 }
 0x5b9   :  { %v680_v30 = vpop.permute.xlu1 %679  ;;  %v3845_v32 = vadd.f32 %v569_v29, %v561_v27 }
 0x5ba   :  { %v3847_v34 = vadd.f32 %v680_v30, %v672_v28 }
 0x5bb   :  { %3376 = vtanh.f32 %v3845_v32 }
 0x5bc   :  { %3378 = vtanh.f32 %v3847_v34  ;;  %v957_v13 = vrot.slane %v3847_v34, 6 }
 0x5c5   :  { %v3377_v35 = vpop.eup %3376 }
 0x5c6   :  { %v3379_v36 = vpop.eup %3378  ;;  %574 = vrot.lane.b32.xlu0 %v3377_v35, %s3588_s3 }
 0x5c7   :  { %685 = vrot.lane.b32.xlu1 %v3379_v36, %s3588_s3 }
 0x638   :  { %v575_v37 = vpop.permute.xlu0 %574 }
 0x639   :  { %v686_v38 = vpop.permute.xlu1 %685  ;;  %v3853_v39 = vmul.f32 %v3373_v20, %v575_v37 }
 0x63a   :  { %v688_v40 = vmul.f32 %v3375_v22, %v686_v38 }
 0x63b   :  { %690 = vrot.lane.b32.xlu0 %v3853_v39, %s3589_s6 }
 0x63c   :  { %v765_v41 = vrot.slane %v688_v40, 2 }
 0x63e   :  { %766 = vrot.lane.b32.xlu1 %v765_v41, %s3589_s6 }
 0x6ad   :  { %v691_v42 = vpop.permute.xlu0 %690 }
 0x6ae   :  { %2950 = vmatmul.mubr.msk.f32.vlgmr.msra.gmra.mrb[6].mxu0 %vm222_vm5, %v691_v42 }
 0x6af   :  { %3224 = vmatpush3.bf16.msra.mxu0 %v3741_v11  ;;  %2971 = vmatprep.mubr.msk.f32.mxu0 %vm3586_vm4, %v3587_v19 }
 0x6b0   :  { %v767_v43 = vpop.permute.xlu1 %766  ;;  %3225 = vmatprep.subr.bf16.mxu0 %v3585_v14 }
 0x6b1   :  { %2961 = vmatmul.mubr.msk.f32.vlgmr.msra.gmra.mrb[6].mxu1 %vm222_vm5, %v767_v43 }
 0x6b2   :  { %3230 = vmatpush3.bf16.msra.mxu1 %v3782_v48  ;;  %2982 = vmatprep.mubr.msk.f32.mxu1 %vm3586_vm4, %v3587_v19 }
 0x6b3   :  { %3227 = vmatpush3.bf16.msra.mxu0 %v3752_v18  ;;  %3231 = vmatprep.subr.bf16.mxu1 %v3585_v14 }
 0x6b4   :  { %3234 = vmatprep.subr.bf16.mxu0 %v3585_v14 }
 0x6b6   :  { %2972 = vmatmul.mubr.msk.f32.vlgmr.msra.gmra.mrb[8].mxu0 %vm222_vm5, %v767_v43  ;;  %3233 = vmatpush3.bf16.msra.mxu1 %v3799_v55 }
 0x6b7   :  { %3240 = vmatprep.subr.bf16.mxu1 %v3585_v14  ;;  %3236 = vmatpush3.bf16.msra.mxu0 %v3790_v52 }
 0x6b8   :  { %3237 = vmatprep.subr.bf16.mxu0 %v3585_v14  ;;  %2993 = vmatprep.mubr.msk.f32.mxu0 %vm3586_vm4, %v3587_v19 }
 0x6bb   :  { %3239 = vmatpush3.bf16.msra.mxu0 %v3803_v56 }
 0x6bc   :  { %3246 = vmatprep.subr.bf16.mxu0 %v3585_v14 }
 0x781   :  { %v760_v44 = vpop.f32.mrb[6].mxu0 }
 0x782   :  { %v2951_v45 = vpop.f32.mrb[7].mxu0 }
 0x784   :  { %v836_v46 = vpop.f32.mrb[6].mxu1 }
 0x785   :  { %v837_v47 = vadd.f32 %v836_v46, %v760_v44  ;;  %v2962_v49 = vpop.f32.mrb[7].mxu1 }
 0x787   :  { %v840_v50 = vadd.f32 %v3836_v63, %v837_v47 }
 0x789   :  { %3380 = vtanh.f32 %v840_v50  ;;  %v941_v51 = vpop.f32.mrb[8].mxu0  ;;  %v2704_v60 = vmul.f32 -1.442695, %v840_v50 }
 0x78a   :  { %v946_v53 = vrot.slane %v941_v51, 4  ;;  %v2973_v54 = vpop.f32.mrb[9].mxu0 }
 0x78c   :  { %v948_v57 = vadd.f32 %v946_v53, %v3774_v33 }
 0x78e   :  { %3382 = vtanh.f32 %v948_v57  ;;  %v2707_v61 = vmul.f32 -1.442695, %v948_v57 }
 0x78f   :  { %3384 = vpow2.f32 %v2704_v60 }
 0x790   :  { %3386 = vpow2.f32 %v2707_v61 }
 0x793   :  { %v3381_v58 = vpop.eup %3380 }
 0x794   :  { %850 = vrot.lane.b32.xlu0 %v3381_v58, %s3588_s3 }
 0x798   :  { %v3383_v59 = vpop.eup %3382 }
 0x799   :  { %961 = vrot.lane.b32.xlu1 %v3383_v59, %s3588_s3  ;;  %v3385_v62 = vpop.eup %3384 }
 0x79a   :  { %v844_v0 = vadd.f32 1.0, %v3385_v62  ;;  %v3387_v1 = vpop.eup %3386 }
 0x79b   :  { %v952_v2 = vadd.f32 1.0, %v3387_v1 }
 0x79c   :  { %3388 = vrcp.f32 %v844_v0 }
 0x79d   :  { %3390 = vrcp.f32 %v952_v2 }
 0x7a6   :  { %v3389_v3 = vpop.eup %3388 }
 0x7a7   :  { %v3391_v6 = vpop.eup %3390  ;;  %v848_v9 = vmul.f32 %v3389_v3, %v3845_v32 }
 0x7a8   :  { %v959_v15 = vmul.f32 %v3391_v6, %v957_v13 }
 0x806   :  { %v851_v4 = vpop.permute.xlu0 %850 }
 0x807   :  { %v853_v5 = vmul.f32 %v3389_v3, %v851_v4 }
 0x809   :  { %855 = vrot.lane.b32.xlu0 %v853_v5, %s3589_s6 }
 0x80b   :  { %v962_v7 = vpop.permute.xlu1 %961 }
 0x80c   :  { %v964_v8 = vmul.f32 %v3391_v6, %v962_v7 }
 0x80e   :  { %966 = vrot.lane.b32.xlu1 %v964_v8, %s3589_s6 }
 0x87b   :  { %v856_v10 = vpop.permute.xlu0 %855 }
 0x87c   :  { %v3886_v12 = vadd.f32 %v856_v10, %v848_v9 }
 0x87e   :  { %3392 = vtanh.f32 %v3886_v12 }
 0x880   :  { %v967_v16 = vpop.permute.xlu1 %966 }
 0x881   :  { %v3890_v17 = vadd.f32 %v967_v16, %v959_v15 }
 0x883   :  { %3394 = vtanh.f32 %v3890_v17  ;;  %v1244_v59 = vrot.slane %v3890_v17, 6 }
 0x888   :  { %v3393_v20 = vpop.eup %3392 }
 0x889   :  { %861 = vrot.lane.b32.xlu0 %v3393_v20, %s3588_s3 }
 0x88d   :  { %v3395_v21 = vpop.eup %3394 }
 0x88e   :  { %972 = vrot.lane.b32.xlu1 %v3395_v21, %s3588_s3 }
 0x8fb   :  { %v862_v22 = vpop.permute.xlu0 %861 }
 0x8fc   :  { %v3895_v23 = vmul.f32 %v3389_v3, %v862_v22 }
 0x8fe   :  { %977 = vrot.lane.b32.xlu0 %v3895_v23, %s3589_s6 }
 0x900   :  { %v973_v24 = vpop.permute.xlu1 %972 }
 0x901   :  { %v975_v25 = vmul.f32 %v3391_v6, %v973_v24 }
 0x903   :  { %v1052_v26 = vrot.slane %v975_v25, 4 }
 0x905   :  { %1053 = vrot.lane.b32.xlu1 %v1052_v26, %s3589_s6 }
 0x970   :  { %v978_v27 = vpop.permute.xlu0 %977 }
 0x971   :  { %2983 = vmatmul.mubr.msk.f32.vlgmr.msra.gmra.mrb[8].mxu1 %vm222_vm5, %v978_v27 }
 0x972   :  { %3242 = vmatpush3.bf16.msra.mxu1 %v3741_v11  ;;  %3004 = vmatprep.mubr.msk.f32.mxu1 %vm3586_vm4, %v3587_v19 }
 0x973   :  { %3243 = vmatprep.subr.bf16.mxu1 %v3585_v14 }
 0x976   :  { %3245 = vmatpush3.bf16.msra.mxu1 %v3752_v18 }
 0x977   :  { %v1054_v28 = vpop.permute.xlu1 %1053  ;;  %3252 = vmatprep.subr.bf16.mxu1 %v3585_v14 }
 0x978   :  { %2994 = vmatmul.mubr.msk.f32.vlgmr.msra.gmra.mrb[10].mxu0 %vm222_vm5, %v1054_v28 }
 0x979   :  { %3005 = vmatmul.mubr.msk.f32.vlgmr.msra.gmra.mrb[10].mxu1 %vm222_vm5, %v1054_v28  ;;  %3248 = vmatpush3.bf16.msra.mxu0 %v3782_v48 }
 0x97a   :  { %3249 = vmatprep.subr.bf16.mxu0 %v3585_v14  ;;  %3254 = vmatpush3.bf16.msra.mxu1 %v3790_v52 }
 0x97b   :  { %3255 = vmatprep.subr.bf16.mxu1 %v3585_v14  ;;  %3015 = vmatprep.mubr.msk.f32.mxu0 %vm3586_vm4, %v3587_v19 }
 0x97c   :  { %3026 = vmatprep.mubr.msk.f32.mxu1 %vm3586_vm4, %v3587_v19 }
 0x97d   :  { %3251 = vmatpush3.bf16.msra.mxu0 %v3799_v55 }
 0x97e   :  { %3257 = vmatpush3.bf16.msra.mxu1 %v3803_v56  ;;  %3258 = vmatprep.subr.bf16.mxu0 %v3585_v14 }
 0x97f   :  { %3264 = vmatprep.subr.bf16.mxu1 %v3585_v14 }
 0xa44   :  { %v1047_v29 = vpop.f32.mrb[8].mxu1 }
 0xa45   :  { %v2984_v30 = vpop.f32.mrb[9].mxu1 }
 0xa4b   :  { %v1123_v32 = vpop.f32.mrb[10].mxu0 }
 0xa4c   :  { %v1124_v34 = vadd.f32 %v1123_v32, %v1047_v29  ;;  %v1228_v35 = vpop.f32.mrb[10].mxu1  ;;  %v2995_v36 = vpop.f32.mrb[11].mxu0 }
 0xa4d   :  { %v1233_v37 = vrot.slane %v1228_v35, 2  ;;  %v3006_v38 = vpop.f32.mrb[11].mxu1 }
 0xa4e   :  { %v1127_v40 = vadd.f32 %v3836_v63, %v1124_v34 }
 0xa4f   :  { %v1235_v41 = vadd.f32 %v1233_v37, %v3774_v33 }
 0xa50   :  { %3396 = vtanh.f32 %v1127_v40  ;;  %v2710_v44 = vmul.f32 -1.442695, %v1127_v40 }
 0xa51   :  { %3398 = vtanh.f32 %v1235_v41  ;;  %v2713_v45 = vmul.f32 -1.442695, %v1235_v41 }
 0xa52   :  { %3400 = vpow2.f32 %v2710_v44 }
 0xa53   :  { %3402 = vpow2.f32 %v2713_v45 }
 0xa5a   :  { %v3397_v42 = vpop.eup %3396 }
 0xa5b   :  { %v3399_v43 = vpop.eup %3398  ;;  %1137 = vrot.lane.b32.xlu1 %v3397_v42, %s3588_s3 }
 0xa5c   :  { %1248 = vrot.lane.b32.xlu0 %v3399_v43, %s3588_s3  ;;  %v3401_v46 = vpop.eup %3400 }
 0xa5d   :  { %v3403_v47 = vpop.eup %3402  ;;  %v1131_v49 = vadd.f32 1.0, %v3401_v46 }
 0xa5e   :  { %v1239_v50 = vadd.f32 1.0, %v3403_v47 }
 0xa5f   :  { %3404 = vrcp.f32 %v1131_v49 }
 0xa60   :  { %3406 = vrcp.f32 %v1239_v50 }
 0xa69   :  { %v3405_v51 = vpop.eup %3404 }
 0xa6a   :  { %v3407_v53 = vpop.eup %3406  ;;  %v1135_v60 = vmul.f32 %v3405_v51, %v3886_v12 }
 0xa6b   :  { %v1246_v61 = vmul.f32 %v3407_v53, %v1244_v59 }
 0xacd   :  { %v1138_v33 = vpop.permute.xlu1 %1137 }
 0xace   :  { %v1249_v54 = vpop.permute.xlu0 %1248  ;;  %v1140_v57 = vmul.f32 %v3405_v51, %v1138_v33 }
 0xacf   :  { %v1251_v58 = vmul.f32 %v3407_v53, %v1249_v54 }
 0xad0   :  { %1142 = vrot.lane.b32.xlu1 %v1140_v57, %s3589_s6 }
 0xad1   :  { %1253 = vrot.lane.b32.xlu0 %v1251_v58, %s3589_s6 }
 0xb42   :  { %v1143_v62 = vpop.permute.xlu1 %1142 }
 0xb43   :  { %v1254_v0 = vpop.permute.xlu0 %1253  ;;  %v3929_v1 = vadd.f32 %v1143_v62, %v1135_v60 }
 0xb44   :  { %v3931_v2 = vadd.f32 %v1254_v0, %v1246_v61 }
 0xb45   :  { %3408 = vtanh.f32 %v3929_v1 }
 0xb46   :  { %3410 = vtanh.f32 %v3931_v2  ;;  %v1528_v44 = vrot.slane %v3931_v2, 6 }
 0xb4f   :  { %v3409_v3 = vpop.eup %3408 }
 0xb50   :  { %v3411_v4 = vpop.eup %3410  ;;  %1148 = vrot.lane.b32.xlu1 %v3409_v3, %s3588_s3 }
 0xb51   :  { %1259 = vrot.lane.b32.xlu0 %v3411_v4, %s3588_s3 }
 0xbc2   :  { %v1149_v5 = vpop.permute.xlu1 %1148 }
 0xbc3   :  { %v1260_v6 = vpop.permute.xlu0 %1259  ;;  %v3937_v7 = vmul.f32 %v3405_v51, %v1149_v5 }
 0xbc4   :  { %v1262_v8 = vmul.f32 %v3407_v53, %v1260_v6 }
 0xbc5   :  { %1264 = vrot.lane.b32.xlu0 %v3937_v7, %s3589_s6 }
 0xbc6   :  { %v1339_v9 = vrot.slane %v1262_v8, 6 }
 0xbc8   :  { %1340 = vrot.lane.b32.xlu1 %v1339_v9, %s3589_s6 }
 0xc37   :  { %v1265_v10 = vpop.permute.xlu0 %1264 }
 0xc38   :  { %3016 = vmatmul.mubr.msk.f32.vlgmr.msra.gmra.mrb[12].mxu0 %vm222_vm5, %v1265_v10 }
 0xc39   :  { %3260 = vmatpush3.bf16.msra.mxu0 %v3741_v11  ;;  %3037 = vmatprep.mubr.msk.f32.mxu0 %vm3586_vm4, %v3587_v19 }
 0xc3a   :  { %v1341_v12 = vpop.permute.xlu1 %1340  ;;  %3261 = vmatprep.subr.bf16.mxu0 %v3585_v14 }
 0xc3b   :  { %3027 = vmatmul.mubr.msk.f32.vlgmr.msra.gmra.mrb[12].mxu1 %vm222_vm5, %v1341_v12 }
 0xc3c   :  { %3266 = vmatpush3.bf16.msra.mxu1 %v3782_v48  ;;  %3048 = vmatprep.mubr.msk.f32.mxu1 %vm3586_vm4, %v3587_v19 }
 0xc3d   :  { %3263 = vmatpush3.bf16.msra.mxu0 %v3752_v18  ;;  %3267 = vmatprep.subr.bf16.mxu1 %v3585_v14 }
 0xc3e   :  { %3270 = vmatprep.subr.bf16.mxu0 %v3585_v14 }
 0xc40   :  { %3038 = vmatmul.mubr.msk.f32.vlgmr.msra.gmra.mrb[14].mxu0 %vm222_vm5, %v1341_v12  ;;  %3269 = vmatpush3.bf16.msra.mxu1 %v3799_v55 }
 0xc41   :  { %3272 = vmatpush3.bf16.msra.mxu0 %v3790_v52  ;;  %3276 = vmatprep.subr.bf16.mxu1 %v3585_v14 }
 0xc42   :  { %3273 = vmatprep.subr.bf16.mxu0 %v3585_v14  ;;  %3059 = vmatprep.mubr.msk.f32.mxu0 %vm3586_vm4, %v3587_v19 }
 0xc45   :  { %3275 = vmatpush3.bf16.msra.mxu0 %v3803_v56 }
 0xc46   :  { %3282 = vmatprep.subr.bf16.mxu0 %v3585_v14 }
 0xd0b   :  { %v1334_v13 = vpop.f32.mrb[12].mxu0 }
 0xd0c   :  { %v3017_v15 = vpop.f32.mrb[13].mxu0 }
 0xd0e   :  { %v1410_v16 = vpop.f32.mrb[12].mxu1 }
 0xd0f   :  { %v1411_v17 = vadd.f32 %v1410_v16, %v1334_v13  ;;  %v3028_v20 = vpop.f32.mrb[13].mxu1 }
 0xd11   :  { %v1414_v21 = vadd.f32 %v3836_v63, %v1411_v17 }
 0xd13   :  { %3412 = vtanh.f32 %v1414_v21  ;;  %v1515_v22 = vpop.f32.mrb[14].mxu0  ;;  %v2716_v28 = vmul.f32 -1.442695, %v1414_v21 }
 0xd14   :  { %v1519_v24 = vadd.f32 %v1515_v22, %v3772_v31  ;;  %v3039_v25 = vpop.f32.mrb[15].mxu0 }
 0xd16   :  { %3414 = vtanh.f32 %v1519_v24  ;;  %v2719_v29 = vmul.f32 -1.442695, %v1519_v24 }
 0xd17   :  { %3416 = vpow2.f32 %v2716_v28 }
 0xd18   :  { %3418 = vpow2.f32 %v2719_v29 }
 0xd1d   :  { %v3413_v26 = vpop.eup %3412 }
 0xd1e   :  { %1424 = vrot.lane.b32.xlu0 %v3413_v26, %s3588_s3 }
 0xd20   :  { %v3415_v27 = vpop.eup %3414 }
 0xd21   :  { %1532 = vrot.lane.b32.xlu1 %v3415_v27, %s3588_s3  ;;  %v3417_v30 = vpop.eup %3416 }
 0xd22   :  { %v3419_v32 = vpop.eup %3418  ;;  %v1418_v34 = vadd.f32 1.0, %v3417_v30 }
 0xd23   :  { %v1523_v35 = vadd.f32 1.0, %v3419_v32 }
 0xd24   :  { %3420 = vrcp.f32 %v1418_v34 }
 0xd25   :  { %3422 = vrcp.f32 %v1523_v35 }
 0xd2e   :  { %v3421_v36 = vpop.eup %3420 }
 0xd2f   :  { %v3423_v40 = vpop.eup %3422  ;;  %v1422_v43 = vmul.f32 %v3421_v36, %v3929_v1 }
 0xd30   :  { %v1530_v47 = vmul.f32 %v3423_v40, %v1528_v44 }
 0xd90   :  { %v1425_v37 = vpop.permute.xlu0 %1424 }
 0xd91   :  { %v1427_v38 = vmul.f32 %v3421_v36, %v1425_v37 }
 0xd93   :  { %1429 = vrot.lane.b32.xlu0 %v1427_v38, %s3589_s6  ;;  %v1533_v41 = vpop.permute.xlu1 %1532 }
 0xd94   :  { %v1535_v42 = vmul.f32 %v3423_v40, %v1533_v41 }
 0xd96   :  { %1537 = vrot.lane.b32.xlu1 %v1535_v42, %s3589_s6 }
 0xe05   :  { %v1430_v45 = vpop.permute.xlu0 %1429 }
 0xe06   :  { %v3971_v46 = vadd.f32 %v1430_v45, %v1422_v43 }
 0xe08   :  { %3424 = vtanh.f32 %v3971_v46  ;;  %v1538_v49 = vpop.permute.xlu1 %1537 }
 0xe09   :  { %v3974_v50 = vadd.f32 %v1538_v49, %v1530_v47 }
 0xe0b   :  { %3426 = vtanh.f32 %v3974_v50  ;;  %v1814_v32 = vrot.slane %v3974_v50, 6 }
 0xe12   :  { %v3425_v51 = vpop.eup %3424 }
 0xe13   :  { %1435 = vrot.lane.b32.xlu0 %v3425_v51, %s3588_s3 }
 0xe15   :  { %v3427_v33 = vpop.eup %3426 }
 0xe16   :  { %1543 = vrot.lane.b32.xlu1 %v3427_v33, %s3588_s3 }
 0xe85   :  { %v1436_v53 = vpop.permute.xlu0 %1435 }
 0xe86   :  { %v3979_v54 = vmul.f32 %v3421_v36, %v1436_v53 }
 0xe88   :  { %1548 = vrot.lane.b32.xlu0 %v3979_v54, %s3589_s6  ;;  %v1544_v57 = vpop.permute.xlu1 %1543 }
 0xe89   :  { %v1546_v58 = vmul.f32 %v3423_v40, %v1544_v57 }
 0xe8b   :  { %1623 = vrot.lane.b32.xlu1 %v1546_v58, %s3589_s6 }
 0xefa   :  { %v1549_v59 = vpop.permute.xlu0 %1548 }
 0xefb   :  { %3049 = vmatmul.mubr.msk.f32.vlgmr.msra.gmra.mrb[14].mxu1 %vm222_vm5, %v1549_v59 }
 0xefc   :  { %3278 = vmatpush3.bf16.msra.mxu1 %v3741_v11  ;;  %3070 = vmatprep.mubr.msk.f32.mxu1 %vm3586_vm4, %v3587_v19 }
 0xefd   :  { %v1624_v60 = vpop.permute.xlu1 %1623  ;;  %3279 = vmatprep.subr.bf16.mxu1 %v3585_v14 }
 0xefe   :  { %3060 = vmatmul.mubr.msk.f32.vlgmr.msra.gmra.mrb[16].mxu0 %vm222_vm5, %v1624_v60 }
 0xeff   :  { %3284 = vmatpush3.bf16.msra.mxu0 %v3782_v48  ;;  %3081 = vmatprep.mubr.msk.f32.mxu0 %vm3586_vm4, %v3587_v19 }
 0xf00   :  { %3281 = vmatpush3.bf16.msra.mxu1 %v3752_v18  ;;  %3285 = vmatprep.subr.bf16.mxu0 %v3585_v14 }
 0xf01   :  { %3288 = vmatprep.subr.bf16.mxu1 %v3585_v14 }
 0xf03   :  { %3071 = vmatmul.mubr.msk.f32.vlgmr.msra.gmra.mrb[16].mxu1 %vm222_vm5, %v1624_v60  ;;  %3287 = vmatpush3.bf16.msra.mxu0 %v3799_v55 }
 0xf04   :  { %3290 = vmatpush3.bf16.msra.mxu1 %v3790_v52  ;;  %3294 = vmatprep.subr.bf16.mxu0 %v3585_v14 }
 0xf05   :  { %3291 = vmatprep.subr.bf16.mxu1 %v3585_v14  ;;  %3092 = vmatprep.mubr.msk.f32.mxu1 %vm3586_vm4, %v3587_v19 }
 0xf08   :  { %3293 = vmatpush3.bf16.msra.mxu1 %v3803_v56 }
 0xf09   :  { %3300 = vmatprep.subr.bf16.mxu1 %v3585_v14 }
 0xfce   :  { %v1618_v61 = vpop.f32.mrb[14].mxu1 }
 0xfcf   :  { %v3050_v62 = vpop.f32.mrb[15].mxu1 }
 0xfd1   :  { %v1693_v0 = vpop.f32.mrb[16].mxu0 }
 0xfd2   :  { %v1694_v1 = vadd.f32 %v1693_v0, %v1618_v61  ;;  %v3061_v2 = vpop.f32.mrb[17].mxu0 }
 0xfd4   :  { %v1697_v3 = vadd.f32 %v3836_v63, %v1694_v1 }
 0xfd6   :  { %3428 = vtanh.f32 %v1697_v3  ;;  %v1798_v4 = vpop.f32.mrb[16].mxu1  ;;  %v2722_v12 = vmul.f32 -1.442695, %v1697_v3 }
 0xfd7   :  { %v1803_v5 = vrot.slane %v1798_v4, 6  ;;  %v3072_v6 = vpop.f32.mrb[17].mxu1 }
 0xfd9   :  { %v1805_v8 = vadd.f32 %v1803_v5, %v3772_v31 }
 0xfdb   :  { %3430 = vtanh.f32 %v1805_v8  ;;  %v2725_v13 = vmul.f32 -1.442695, %v1805_v8 }
 0xfdc   :  { %3432 = vpow2.f32 %v2722_v12 }
 0xfdd   :  { %3434 = vpow2.f32 %v2725_v13 }
 0xfe0   :  { %v3429_v9 = vpop.eup %3428 }
 0xfe1   :  { %1707 = vrot.lane.b32.xlu0 %v3429_v9, %s3588_s3 }
 0xfe5   :  { %v3431_v10 = vpop.eup %3430 }
 0xfe6   :  { %1818 = vrot.lane.b32.xlu1 %v3431_v10, %s3588_s3  ;;  %v3433_v15 = vpop.eup %3432 }
 0xfe7   :  { %v1701_v16 = vadd.f32 1.0, %v3433_v15  ;;  %v3435_v17 = vpop.eup %3434 }
 0xfe8   :  { %v1809_v20 = vadd.f32 1.0, %v3435_v17 }
 0xfe9   :  { %3436 = vrcp.f32 %v1701_v16 }
 0xfea   :  { %3438 = vrcp.f32 %v1809_v20 }
 0xff3   :  { %v3437_v21 = vpop.eup %3436 }
 0xff4   :  { %v3439_v25 = vpop.eup %3438  ;;  %v1705_v28 = vmul.f32 %v3437_v21, %v3971_v46 }
 0xff5   :  { %v1816_v34 = vmul.f32 %v3439_v25, %v1814_v32 }
0x1053   :  { %v1708_v22 = vpop.permute.xlu0 %1707 }
0x1054   :  { %v1710_v24 = vmul.f32 %v3437_v21, %v1708_v22 }
0x1056   :  { %1712 = vrot.lane.b32.xlu0 %v1710_v24, %s3589_s6 }
0x1058   :  { %v1819_v26 = vpop.permute.xlu1 %1818 }
0x1059   :  { %v1821_v27 = vmul.f32 %v3439_v25, %v1819_v26 }
0x105b   :  { %1823 = vrot.lane.b32.xlu1 %v1821_v27, %s3589_s6 }
0x10c8   :  { %v1713_v29 = vpop.permute.xlu0 %1712 }
0x10c9   :  { %v4012_v30 = vadd.f32 %v1713_v29, %v1705_v28 }
0x10cb   :  { %3440 = vtanh.f32 %v4012_v30 }
0x10cd   :  { %v1824_v35 = vpop.permute.xlu1 %1823 }
0x10ce   :  { %v4016_v36 = vadd.f32 %v1824_v35, %v1816_v34 }
0x10d0   :  { %3442 = vtanh.f32 %v4016_v36  ;;  %v2101_v15 = vrot.slane %v4016_v36, 6 }
0x10d5   :  { %v3441_v37 = vpop.eup %3440 }
0x10d6   :  { %1718 = vrot.lane.b32.xlu0 %v3441_v37, %s3588_s3 }
0x10da   :  { %v3443_v38 = vpop.eup %3442 }
0x10db   :  { %1829 = vrot.lane.b32.xlu1 %v3443_v38, %s3588_s3 }
0x1148   :  { %v1719_v40 = vpop.permute.xlu0 %1718 }
0x1149   :  { %v4021_v41 = vmul.f32 %v3437_v21, %v1719_v40 }
0x114b   :  { %1834 = vrot.lane.b32.xlu0 %v4021_v41, %s3589_s6 }
0x114d   :  { %v1830_v42 = vpop.permute.xlu1 %1829 }
0x114e   :  { %v1832_v43 = vmul.f32 %v3439_v25, %v1830_v42 }
0x1150   :  { %v1909_v44 = vrot.slane %v1832_v43, 2 }
0x1152   :  { %1910 = vrot.lane.b32.xlu1 %v1909_v44, %s3589_s6 }
0x11bd   :  { %v1835_v45 = vpop.permute.xlu0 %1834 }
0x11be   :  { %3082 = vmatmul.mubr.msk.f32.vlgmr.msra.gmra.mrb[18].mxu0 %vm222_vm5, %v1835_v45 }
0x11bf   :  { %3296 = vmatpush3.bf16.msra.mxu0 %v3741_v11  ;;  %3103 = vmatprep.mubr.msk.f32.mxu0 %vm3586_vm4, %v3587_v19 }
0x11c0   :  { %3297 = vmatprep.subr.bf16.mxu0 %v3585_v14 }
0x11c3   :  { %3299 = vmatpush3.bf16.msra.mxu0 %v3752_v18 }
0x11c4   :  { %v1911_v46 = vpop.permute.xlu1 %1910  ;;  %3306 = vmatprep.subr.bf16.mxu0 %v3585_v14 }
0x11c5   :  { %3093 = vmatmul.mubr.msk.f32.vlgmr.msra.gmra.mrb[18].mxu1 %vm222_vm5, %v1911_v46 }
0x11c6   :  { %3104 = vmatmul.mubr.msk.f32.vlgmr.msra.gmra.mrb[20].mxu0 %vm222_vm5, %v1911_v46  ;;  %3302 = vmatpush3.bf16.msra.mxu1 %v3782_v48 }
0x11c7   :  { %3303 = vmatprep.subr.bf16.mxu1 %v3585_v14  ;;  %3308 = vmatpush3.bf16.msra.mxu0 %v3790_v52 }
0x11c8   :  { %3114 = vmatprep.mubr.msk.f32.mxu1 %vm3586_vm4, %v3587_v19  ;;  %3309 = vmatprep.subr.bf16.mxu0 %v3585_v14 }
0x11c9   :  { %3125 = vmatprep.mubr.msk.f32.mxu0 %vm3586_vm4, %v3587_v19 }
0x11ca   :  { %3305 = vmatpush3.bf16.msra.mxu1 %v3799_v55 }
0x11cb   :  { %3312 = vmatprep.subr.bf16.mxu1 %v3585_v14  ;;  %3311 = vmatpush3.bf16.msra.mxu0 %v3803_v56 }
0x11cc   :  { %3318 = vmatprep.subr.bf16.mxu0 %v3585_v14 }
0x1291   :  { %v1904_v47 = vpop.f32.mrb[18].mxu0 }
0x1292   :  { %v3083_v49 = vpop.f32.mrb[19].mxu0 }
0x1298   :  { %v1980_v50 = vpop.f32.mrb[18].mxu1 }
0x1299   :  { %v1981_v51 = vadd.f32 %v1980_v50, %v1904_v47  ;;  %v3094_v33 = vpop.f32.mrb[19].mxu1  ;;  %v2085_v53 = vpop.f32.mrb[20].mxu0 }
0x129a   :  { %v2090_v57 = vrot.slane %v2085_v53, 4  ;;  %v3105_v58 = vpop.f32.mrb[21].mxu0 }
0x129b   :  { %v1984_v59 = vadd.f32 %v3836_v63, %v1981_v51 }
0x129c   :  { %v2092_v60 = vadd.f32 %v2090_v57, %v3772_v31 }
0x129d   :  { %3444 = vtanh.f32 %v1984_v59  ;;  %v2728_v0 = vmul.f32 -1.442695, %v1984_v59 }
0x129e   :  { %3446 = vtanh.f32 %v2092_v60  ;;  %v2731_v1 = vmul.f32 -1.442695, %v2092_v60 }
0x129f   :  { %3448 = vpow2.f32 %v2728_v0 }
0x12a0   :  { %3450 = vpow2.f32 %v2731_v1 }
0x12a7   :  { %v3445_v61 = vpop.eup %3444 }
0x12a8   :  { %v3447_v62 = vpop.eup %3446  ;;  %1994 = vrot.lane.b32.xlu0 %v3445_v61, %s3588_s3 }
0x12a9   :  { %2105 = vrot.lane.b32.xlu1 %v3447_v62, %s3588_s3  ;;  %v3449_v2 = vpop.eup %3448 }
0x12aa   :  { %v3451_v3 = vpop.eup %3450  ;;  %v1988_v4 = vadd.f32 1.0, %v3449_v2 }
0x12ab   :  { %v2096_v5 = vadd.f32 1.0, %v3451_v3 }
0x12ac   :  { %3452 = vrcp.f32 %v1988_v4 }
0x12ad   :  { %3454 = vrcp.f32 %v2096_v5 }
0x12b6   :  { %v3453_v6 = vpop.eup %3452 }
0x12b7   :  { %v3455_v9 = vpop.eup %3454  ;;  %v1992_v16 = vmul.f32 %v3453_v6, %v4012_v30 }
0x12b8   :  { %v2103_v20 = vmul.f32 %v3455_v9, %v2101_v15  ;;  %v3590_v15 = vmov 0  }
0x12b9   :  { %3349 = vset.pattern.permute.xlu0 %v3590_v15  ;;  %3355 = vset.pattern.permute.xlu1 %v3590_v15  ;;  %v2742_v15 = vld [vmem:[#allocation2] ss:$0 sm:$0xff] }
0x131a   :  { %v1995_v8 = vpop.permute.xlu0 %1994 }
0x131b   :  { %v1997_v10 = vmul.f32 %v3453_v6, %v1995_v8  ;;  %v2106_v12 = vpop.permute.xlu1 %2105 }
0x131c   :  { %v2108_v13 = vmul.f32 %v3455_v9, %v2106_v12 }
0x131d   :  { %1999 = vrot.lane.b32.xlu0 %v1997_v10, %s3589_s6 }
0x131e   :  { %2110 = vrot.lane.b32.xlu1 %v2108_v13, %s3589_s6 }
0x138f   :  { %v2000_v17 = vpop.permute.xlu0 %1999 }
0x1390   :  { %v4055_v21 = vadd.f32 %v2000_v17, %v1992_v16  ;;  %v2111_v22 = vpop.permute.xlu1 %2110 }
0x1391   :  { %v4057_v24 = vadd.f32 %v2111_v22, %v2103_v20 }
0x1392   :  { %3456 = vtanh.f32 %v4055_v21 }
0x1393   :  { %3458 = vtanh.f32 %v4057_v24  ;;  %v2388_v62 = vrot.slane %v4057_v24, 6 }
0x139c   :  { %v3457_v25 = vpop.eup %3456 }
0x139d   :  { %v3459_v26 = vpop.eup %3458  ;;  %2005 = vrot.lane.b32.xlu0 %v3457_v25, %s3588_s3  ;;  %v119_v25 = vld [vmem:[%s4152_s1] sm:$0x3] }
0x139e   :  { %2116 = vrot.lane.b32.xlu1 %v3459_v26, %s3588_s3  ;;  %vm578_vm6 = vcmp.eq.s32.totalorder %v119_v25, 0  ;;  %vm865_vm7 = vcmp.eq.s32.totalorder %v119_v25, 1  ;;  %vm1722_vm8 = vcmp.eq.s32.totalorder %v119_v25, 4  ;;  %vm2296_vm9 = vcmp.eq.s32.totalorder %v119_v25, 6 }
0x139f   :  { %v2699_v26 = vsel %vm578_vm6, 1.0, %v3587_v19  ;;  %vm1152_vm10 = vcmp.eq.s32.totalorder %v119_v25, 2  ;;  %vm1439_vm11 = vcmp.eq.s32.totalorder %v119_v25, 3  ;;  %vm2009_vm12 = vcmp.eq.s32.totalorder %v119_v25, 5 }
0x13a0   :  { %vm2583_vm13 = vcmp.eq.s32.totalorder %v119_v25, 7 }
0x140f   :  { %v2006_v27 = vpop.permute.xlu0 %2005 }
0x1410   :  { %v4063_v28 = vmul.f32 %v3453_v6, %v2006_v27  ;;  %v2117_v29 = vpop.permute.xlu1 %2116  ;;  %v2705_v27 = vsel %vm865_vm7, 1.0, %v3587_v19 }
0x1411   :  { %v2119_v30 = vmul.f32 %v3455_v9, %v2117_v29 }
0x1412   :  { %2121 = vrot.lane.b32.xlu0 %v4063_v28, %s3589_s6 }
0x1413   :  { %v2196_v32 = vrot.slane %v2119_v30, 4  ;;  %v3350_v30 = vpack.i.bf16 %v2705_v27, %v2699_v26 }
0x1415   :  { %2197 = vrot.lane.b32.xlu1 %v2196_v32, %s3589_s6  ;;  %v2723_v32 = vsel %vm1722_vm8, 1.0, %v3587_v19 }
0x1484   :  { %v2122_v34 = vpop.permute.xlu0 %2121 }
0x1485   :  { %3115 = vmatmul.mubr.msk.f32.vlgmr.msra.gmra.mrb[20].mxu1 %vm222_vm5, %v2122_v34 }
0x1486   :  { %3314 = vmatpush3.bf16.msra.mxu1 %v3741_v11  ;;  %3136 = vmatprep.mubr.msk.f32.mxu1 %vm3586_vm4, %v3587_v19 }
0x1487   :  { %v2198_v35 = vpop.permute.xlu1 %2197  ;;  %3315 = vmatprep.subr.bf16.mxu1 %v3585_v14 }
0x1488   :  { %3126 = vmatmul.mubr.msk.f32.vlgmr.msra.gmra.mrb[22].mxu0 %vm222_vm5, %v2198_v35 }
0x1489   :  { %3320 = vmatpush3.bf16.msra.mxu0 %v3782_v48  ;;  %3147 = vmatprep.mubr.msk.f32.mxu0 %vm3586_vm4, %v3587_v19 }
0x148a   :  { %3317 = vmatpush3.bf16.msra.mxu1 %v3752_v18  ;;  %3321 = vmatprep.subr.bf16.mxu0 %v3585_v14 }
0x148b   :  { %3324 = vmatprep.subr.bf16.mxu1 %v3585_v14 }
0x148d   :  { %3137 = vmatmul.mubr.msk.f32.vlgmr.msra.gmra.mrb[22].mxu1 %vm222_vm5, %v2198_v35  ;;  %3323 = vmatpush3.bf16.msra.mxu0 %v3799_v55 }
0x148e   :  { %3326 = vmatpush3.bf16.msra.mxu1 %v3790_v52  ;;  %3158 = vmatprep.mubr.msk.f32.mxu1 %vm3586_vm4, %v3587_v19 }
0x148f   :  { %3327 = vmatprep.subr.bf16.mxu1 %v3585_v14  ;;  %3330 = vmatprep.subr.bf16.mxu0 %v3585_v14 }
0x1492   :  { %3329 = vmatpush3.bf16.msra.mxu1 %v3803_v56 }
0x1558   :  { %v2191_v11 = vpop.f32.mrb[20].mxu1 }
0x1559   :  { %v3116_v18 = vpop.f32.mrb[21].mxu1 }
0x155b   :  { %v2267_v48 = vpop.f32.mrb[22].mxu0 }
0x155c   :  { %v2268_v36 = vadd.f32 %v2267_v48, %v2191_v11  ;;  %v3127_v37 = vpop.f32.mrb[23].mxu0 }
0x155d   :  { %v2711_v37 = vsel %vm1152_vm10, 1.0, %v3587_v19 }
0x155e   :  { %v2271_v38 = vadd.f32 %v3836_v63, %v2268_v36 }
0x1560   :  { %3460 = vtanh.f32 %v2271_v38  ;;  %v2372_v55 = vpop.f32.mrb[22].mxu1  ;;  %v2734_v56 = vmul.f32 -1.442695, %v2271_v38  ;;  %v2717_v38 = vsel %vm1439_vm11, 1.0, %v3587_v19 }
0x1561   :  { %v2377_v40 = vrot.slane %v2372_v55, 2  ;;  %v3138_v52 = vpop.f32.mrb[23].mxu1  ;;  %v2729_v55 = vsel %vm2009_vm12, 1.0, %v3587_v19 }
0x1563   :  { %v2379_v42 = vadd.f32 %v2377_v40, %v3772_v31  ;;  %v2741_v40 = vsel %vm2583_vm13, 1.0, %v3587_v19 }
0x1565   :  { %3462 = vtanh.f32 %v2379_v42  ;;  %v2737_v45 = vmul.f32 -1.442695, %v2379_v42 }
0x1566   :  { %3464 = vpow2.f32 %v2734_v56  ;;  %v2594_v56 = vld [vmem:[%s4161_s10 + $0x8] sm:$0xff] }
0x1567   :  { %3466 = vpow2.f32 %v2737_v45  ;;  %v2595_v45 = vld [vmem:[%s4161_s10 + $0x10] sm:$0xff] }
0x156a   :  { %v3461_v43 = vpop.eup %3460 }
0x156b   :  { %2281 = vrot.lane.b32.xlu1 %v3461_v43, %s3588_s3 }
0x156f   :  { %v3463_v44 = vpop.eup %3462 }
0x1570   :  { %2392 = vrot.lane.b32.xlu0 %v3463_v44, %s3588_s3  ;;  %v3465_v46 = vpop.eup %3464  ;;  %v2593_v44 = vld [vmem:[%s4161_s10] sm:$0xff] }
0x1571   :  { %v2275_v47 = vadd.f32 1.0, %v3465_v46  ;;  %v3467_v49 = vpop.eup %3466  ;;  %v3331_v46 = vpack.c.bf16 %v2594_v56, %v2593_v44 }
0x1572   :  { %v2383_v50 = vadd.f32 1.0, %v3467_v49 }
0x1573   :  { %3468 = vrcp.f32 %v2275_v47 }
0x1574   :  { %3470 = vrcp.f32 %v2383_v50 }
0x157d   :  { %v3469_v51 = vpop.eup %3468 }
0x157e   :  { %v3471_v53 = vpop.eup %3470  ;;  %v2279_v59 = vmul.f32 %v3469_v51, %v4055_v21 }
0x157f   :  { %v2390_v0 = vmul.f32 %v3471_v53, %v2388_v62 }
0x15dd   :  { %v2282_v33 = vpop.permute.xlu1 %2281 }
0x15de   :  { %v2284_v31 = vmul.f32 %v3469_v51, %v2282_v33 }
0x15e0   :  { %2286 = vrot.lane.b32.xlu1 %v2284_v31, %s3589_s6 }
0x15e2   :  { %v2393_v57 = vpop.permute.xlu0 %2392 }
0x15e3   :  { %v2395_v58 = vmul.f32 %v3471_v53, %v2393_v57 }
0x15e5   :  { %2397 = vrot.lane.b32.xlu0 %v2395_v58, %s3589_s6 }
0x1652   :  { %v2287_v60 = vpop.permute.xlu1 %2286 }
0x1653   :  { %v4095_v61 = vadd.f32 %v2287_v60, %v2279_v59 }
0x1655   :  { %3472 = vtanh.f32 %v4095_v61 }
0x1657   :  { %v2398_v1 = vpop.permute.xlu0 %2397 }
0x1658   :  { %v2400_v2 = vadd.f32 %v2398_v1, %v2390_v0 }
0x165a   :  { %3474 = vtanh.f32 %v2400_v2 }
0x165f   :  { %v3473_v3 = vpop.eup %3472 }
0x1660   :  { %2292 = vrot.lane.b32.xlu1 %v3473_v3, %s3588_s3 }
0x1664   :  { %v3475_v4 = vpop.eup %3474 }
0x1665   :  { %2403 = vrot.lane.b32.xlu0 %v3475_v4, %s3588_s3 }
0x16d2   :  { %v2293_v5 = vpop.permute.xlu1 %2292 }
0x16d3   :  { %v4101_v6 = vmul.f32 %v3469_v51, %v2293_v5 }
0x16d5   :  { %2408 = vrot.lane.b32.xlu0 %v4101_v6, %s3589_s6 }
0x16d7   :  { %v2404_v8 = vpop.permute.xlu0 %2403 }
0x16d8   :  { %v2406_v9 = vmul.f32 %v3471_v53, %v2404_v8 }
0x16da   :  { %v2483_v10 = vrot.slane %v2406_v9, 6 }
0x16dc   :  { %2484 = vrot.lane.b32.xlu1 %v2483_v10, %s3589_s6 }
0x1747   :  { %v2409_v12 = vpop.permute.xlu0 %2408 }
0x1748   :  { %3148 = vmatmul.mubr.msk.f32.vlgmr.msra.gmra.mrb[24].mxu0 %vm222_vm5, %v2409_v12 }
0x1749   :  { %3169 = vmatprep.mubr.msk.f32.mxu0 %vm3586_vm4, %v3587_v19  ;;  %3332 = vmatpush3.bf16.msra.mxu0 %v3331_v46 }
0x174a   :  { %3333 = vmatprep.subr.bf16.mxu0 %v3585_v14 }
0x174e   :  { %v2485_v13 = vpop.permute.xlu1 %2484 }
0x174f   :  { %3159 = vmatmul.mubr.msk.f32.vlgmr.msra.gmra.mrb[24].mxu1 %vm222_vm5, %v2485_v13 }
0x181b   :  { %v2478_v16 = vpop.f32.mrb[24].mxu0 }
0x181c   :  { %v3149_v17 = vpop.f32.mrb[25].mxu0 }
0x1822   :  { %v2554_v20 = vpop.f32.mrb[24].mxu1 }
0x1823   :  { %v2555_v21 = vadd.f32 %v2554_v20, %v2478_v16  ;;  %v3160_v22 = vpop.f32.mrb[25].mxu1 }
0x1825   :  { %v2558_v24 = vadd.f32 %v3836_v63, %v2555_v21  ;;  %v2735_v63 = vsel %vm2296_vm9, 1.0, %v3587_v19  ;;  %v2596_v19 = vld [vmem:[%s4161_s10 + $0x18] sm:$0xff] }
0x1826   :  { %v3334_v47 = vpack.c.bf16 %v2596_v19, %v2595_v45 }
0x1827   :  { %3476 = vtanh.f32 %v2558_v24  ;;  %v2740_v34 = vmul.f32 -1.442695, %v2558_v24 }
0x1828   :  { %3335 = vmatpush3.bf16.msra.mxu0 %v3334_v47 }
0x1829   :  { %3478 = vpow2.f32 %v2740_v34 }
0x1831   :  { %v3477_v29 = vpop.eup %3476 }
0x1832   :  { %2568 = vrot.lane.b32.xlu0 %v3477_v29, %s3588_s3 }
0x1833   :  { %v3479_v35 = vpop.eup %3478 }
0x1834   :  { %v2562_v11 = vadd.f32 1.0, %v3479_v35 }
0x1836   :  { %3351 = vperm.xlu0 %3349, %v3350_v30   ;;  %3480 = vrcp.f32 %v2562_v11 }
0x183a   :  { %1727 = vperm.xlu0 %3349, %v2723_v32  }
0x183e   :  { %2301 = vperm.xlu0 %3349, %v2735_v63  }
0x1840   :  { %v3481_v18 = vpop.eup %3480 }
0x1841   :  { %v2566_v52 = vmul.f32 %v3481_v18, %v4095_v61 }
0x18a4   :  { %v2569_v48 = vpop.permute.xlu0 %2568 }
0x18a5   :  { %v2571_v36 = vmul.f32 %v3481_v18, %v2569_v48 }
0x18a7   :  { %2573 = vrot.lane.b32.xlu1 %v2571_v36, %s3589_s6 }
0x18ab   :  { %1157 = vperm.xlu1 %3355, %v2711_v37  }
0x18af   :  { %1444 = vperm.xlu1 %3355, %v2717_v38  }
0x18b3   :  { %2014 = vperm.xlu1 %3355, %v2729_v55  }
0x18b5   :  { %v3352_v50 = vpop.permute.xlu0 %3351 }
0x18b6   :  { %v3354_v33 = vunpack.i.h.bf16 %v3352_v50  ;;  %v3353_v31 = vunpack.i.l.bf16 %v3352_v50 }
0x18b7   :  { %2588 = vperm.xlu1 %3355, %v2741_v40  }
0x18b8   :  { %v873_v53 = vmul.f32 %v3354_v33, %v3895_v23  ;;  %v586_v57 = vmul.f32 %v3353_v31, %v3853_v39 }
0x18b9   :  { %v1728_v14 = vpop.permute.xlu0 %1727 }
0x18ba   :  { %v874_v60 = vadd.f32 %v873_v53, %v586_v57  ;;  %v1730_v2 = vmul.f32 %v1728_v14, %v4021_v41 }
0x18bd   :  { %v2302_v5 = vpop.permute.xlu0 %2301 }
0x18be   :  { %v2304_v39 = vmul.f32 %v2302_v5, %v4101_v6 }
0x1919   :  { %v2574_v42 = vpop.permute.xlu1 %2573 }
0x191a   :  { %v2576_v43 = vadd.f32 %v2574_v42, %v2566_v52 }
0x191c   :  { %3482 = vtanh.f32 %v2576_v43 }
0x1926   :  { %v3483_v49 = vpop.eup %3482 }
0x1927   :  { %2579 = vrot.lane.b32.xlu0 %v3483_v49, %s3588_s3 }
0x192a   :  { %v1158_v51 = vpop.permute.xlu1 %1157 }
0x192b   :  { %v1160_v59 = vmul.f32 %v1158_v51, %v3937_v7 }
0x192d   :  { %v1161_v62 = vadd.f32 %v1160_v59, %v874_v60 }
0x192e   :  { %v1445_v58 = vpop.permute.xlu1 %1444 }
0x192f   :  { %v1447_v61 = vmul.f32 %v1445_v58, %v3979_v54 }
0x1931   :  { %v1448_v0 = vadd.f32 %v1447_v61, %v1161_v62 }
0x1932   :  { %v2015_v1 = vpop.permute.xlu1 %2014 }
0x1933   :  { %v1731_v3 = vadd.f32 %v1730_v2, %v1448_v0  ;;  %v2017_v4 = vmul.f32 %v2015_v1, %v4063_v28 }
0x1935   :  { %v2018_v8 = vadd.f32 %v2017_v4, %v1731_v3 }
0x1936   :  { %v2589_v10 = vpop.permute.xlu1 %2588 }
0x1937   :  { %v2305_v7 = vadd.f32 %v2304_v39, %v2018_v8 }
0x1999   :  { %v2580_v23 = vpop.permute.xlu0 %2579 }
0x199a   :  { %v2582_v9 = vmul.f32 %v3481_v18, %v2580_v23 }
0x199c   :  { %v2591_v12 = vmul.f32 %v2589_v10, %v2582_v9 }
0x199e   :  { %v2592_v13 = vadd.f32 %v2591_v12, %v2305_v7 }
0x19a0   :  { %2605 = vrot.lane.b32.xlu1 %v2592_v13, %s3589_s6 }
0x1a12   :  { %v2606_v54 = vpop.permute.xlu1 %2605 }
0x1a13   :  { %3170 = vmatmul.mubr.msk.f32.vlgmr.msra.gmra.mrb[26].mxu0 %vm222_vm5, %v2606_v54 }
0x1ae6   :  { %v2675_v41 = vpop.f32.mrb[26].mxu0 }
0x1ae7   :  { %v2676_v16 = vadd.f32 %v2742_v15, %v2675_v41  ;;  %v3171_v28 = vpop.f32.mrb[27].mxu0 }
0x1ae9   :  { %2680 = vst.msk [vmem:[%s4163_s12] sm:$0x3] %vm2679_vm14, %v2676_v16 }
0x1aea   :  { %2685 = vsyncpa [#allocation4], 1 }
0x1aeb   :  { %2686 = vsyncpa [#allocation6], 1 }
0x1aec   :  { %2687 = vsyncpa [#allocation9], 1 }

</bundles_post_ra>
